<compile_context>
chip_gen: v7x
topology: tpu7x:2x2x1
jax: 0.10.0
libtpu: 0.0.40
codegen_flags: <defaults>
</compile_context>

<pallas_src>
import functools

import jax
import jax.numpy as jnp
from jax.experimental import pallas as pl
from jax.experimental.pallas import tpu as pltpu

INPUT_DIM = 32
OUTPUT_DIM = 16
HIDDEN = (512, 256, 128, 64)
BN_EPS = 1e-5


def _round_up(n, m):
    return ((n + m - 1) // m) * m


def _pick_tb(batch):
    """Batch-tile size: bigger tiles amortize per-grid-step overhead, but keep
    tiles small enough that small batches still split across both v7x cores."""
    if batch >= 4096:
        return 512
    if batch >= 1024:
        return 256
    return 128


# ----------------------------------------------------------------------------
# Kernel: 5 MXU matmuls + fused bias / ReLU / sigmoid, one batch tile per step.
# ----------------------------------------------------------------------------
def _mlp_kernel(x_ref,
                w1_ref, b1_ref, w2_ref, b2_ref, w3_ref, b3_ref,
                w4_ref, b4_ref, w5_ref, b5_ref,
                o_ref):
    def layer(h, w_ref, b_ref):
        z = jnp.dot(h.astype(jnp.bfloat16), w_ref[...],
                    preferred_element_type=jnp.float32)
        return jnp.maximum(z + b_ref[...], 0.0)

    h = layer(x_ref[...], w1_ref, b1_ref)
    h = layer(h, w2_ref, b2_ref)
    h = layer(h, w3_ref, b3_ref)
    h = layer(h, w4_ref, b4_ref)

    z = jnp.dot(h.astype(jnp.bfloat16), w5_ref[...],
                preferred_element_type=jnp.float32) + b5_ref[...]
    # sigmoid(z) = 1 / (1 + exp(-z)); exp runs on the EUP slot.
    o_ref[...] = pl.reciprocal(1.0 + jnp.exp(-z)).astype(o_ref.dtype)


# ----------------------------------------------------------------------------
# Wrapper: batch-tiled pallas_call with VMEM-resident weights.
# ----------------------------------------------------------------------------
@functools.partial(jax.jit, static_argnames=("tb",))
def mlp_forward(x, packed, *, tb=None):
    batch = x.shape[0]
    if tb is None:
        tb = _pick_tb(batch)
    pad_batch = _round_up(batch, tb)
    if pad_batch != batch:
        x = jnp.pad(x, ((0, pad_batch - batch), (0, 0)))
    n_tiles = pad_batch // tb
    out_pad = packed[-1].shape[-1]  # 128 (lane-dense output width)

    in_specs = [pl.BlockSpec((tb, x.shape[1]), lambda i: (i, 0))]
    for p in packed:
        # Constant block index -> fetched once, stays VMEM-resident over grid.
        in_specs.append(pl.BlockSpec(p.shape, lambda i: (0, 0)))

    out = pl.pallas_call(
        _mlp_kernel,
        grid=(n_tiles,),
        in_specs=in_specs,
        out_specs=pl.BlockSpec((tb, out_pad), lambda i: (i, 0)),
        out_shape=jax.ShapeDtypeStruct((pad_batch, out_pad), jnp.float32),
        compiler_params=pltpu.CompilerParams(
            dimension_semantics=("parallel",),
            vmem_limit_bytes=8 << 20,
        ),
    )(x, *packed)
    return out[:batch, :OUTPUT_DIM]


# ----------------------------------------------------------------------------
# Parameter construction (mirrors the PyTorch module's shapes, eval mode).
# ----------------------------------------------------------------------------
def init_raw_params(key, input_dim=INPUT_DIM, output_dim=OUTPUT_DIM):
    """Deterministic per-layer params: Linear (w, b) stored as (in, out), plus
    BatchNorm1d affine params and running stats for the 4 hidden layers."""
    dims = [input_dim, *HIDDEN, output_dim]
    raw = []
    for i in range(5):
        d_in, d_out = dims[i], dims[i + 1]
        key, kw, kb, kg, kbt, km, kv = jax.random.split(key, 7)
        bound = 1.0 / float(d_in) ** 0.5
        layer = {
            "w": jax.random.uniform(kw, (d_in, d_out), jnp.float32, -bound, bound),
            "b": jax.random.uniform(kb, (d_out,), jnp.float32, -bound, bound),
        }
        if i < 4:
            layer["gamma"] = 1.0 + 0.1 * jax.random.normal(kg, (d_out,), jnp.float32)
            layer["beta"] = 0.1 * jax.random.normal(kbt, (d_out,), jnp.float32)
            layer["mean"] = 0.1 * jax.random.normal(km, (d_out,), jnp.float32)
            layer["var"] = jnp.abs(
                1.0 + 0.1 * jax.random.normal(kv, (d_out,), jnp.float32))
        raw.append(layer)
    return raw


def pack_params(raw):
    """Fold eval-mode BN into each Linear, zero-pad narrow dims to 128 lanes,
    cast weights to bf16. Returns [w1, b1, ..., w5, b5]; w: bf16 (in, out),
    b: f32 (1, out)."""
    packed = []
    prev_pad = raw[0]["w"].shape[0]  # input dim (32): no padding needed on K
    for i, layer in enumerate(raw):
        w, b = layer["w"], layer["b"]
        if i < 4:
            scale = layer["gamma"] * jax.lax.rsqrt(layer["var"] + BN_EPS)
            shift = layer["beta"] - layer["mean"] * scale
            w = w * scale[None, :]
            b = b * scale + shift
        d_in, d_out = w.shape
        in_pad = prev_pad
        out_pad = _round_up(d_out, 128)
        w = jnp.pad(w, ((0, in_pad - d_in), (0, out_pad - d_out)))
        b = jnp.pad(b, (0, out_pad - d_out))
        packed.append(w.astype(jnp.bfloat16))
        packed.append(b.reshape(1, out_pad).astype(jnp.float32))
        prev_pad = out_pad
    return packed


# ----------------------------------------------------------------------------
# References.
# ----------------------------------------------------------------------------
def reference_forward(x, packed):
    """Pure-JAX mirror of the exact kernel computation (bf16 weights/inputs,
    f32 accumulate, folded BN, padded lanes)."""
    h = x
    for i in range(4):
        w, b = packed[2 * i], packed[2 * i + 1]
        z = jnp.dot(h.astype(jnp.bfloat16), w,
                    preferred_element_type=jnp.float32) + b
        h = jnp.maximum(z, 0.0)
    w, b = packed[8], packed[9]
    z = jnp.dot(h.astype(jnp.bfloat16), w,
                preferred_element_type=jnp.float32) + b
    return (1.0 / (1.0 + jnp.exp(-z)))[:, :OUTPUT_DIM]


def reference_forward_f32(x, raw):
    """Full-f32 reference with un-folded BN (original PyTorch eval semantics)."""
    h = x
    for i in range(4):
        l = raw[i]
        z = h @ l["w"] + l["b"]
        z = (z - l["mean"]) * jax.lax.rsqrt(l["var"] + BN_EPS) * l["gamma"] + l["beta"]
        h = jnp.maximum(z, 0.0)
    l = raw[4]
    return jax.nn.sigmoid(h @ l["w"] + l["b"])


if __name__ == "__main__":
    key = jax.random.PRNGKey(0)
    key, kx = jax.random.split(key)

    batch = 200  # padded to 256 internally -> 2 batch tiles of 128
    x = jax.random.normal(kx, (batch, INPUT_DIM), jnp.float32)

    raw = init_raw_params(key)
    packed = pack_params(raw)

    out = jax.block_until_ready(mlp_forward(x, packed))
    assert out.shape == (batch, OUTPUT_DIM)

    # Strict check: kernel vs. exact pure-JAX mirror of the same computation.
    ref = reference_forward(x, packed)
    max_err = float(jnp.max(jnp.abs(out - ref)))
    assert jnp.allclose(out, ref, atol=1e-4, rtol=1e-4), f"mirror err {max_err}"

    # Sanity check: bf16/folded kernel vs. full-f32 un-folded BN reference.
    ref32 = reference_forward_f32(x, raw)
    assert jnp.allclose(out, ref32, atol=5e-2, rtol=5e-2), (
        f"f32 sanity err {float(jnp.max(jnp.abs(out - ref32)))}")

    print("KERNEL_OK")
</pallas_src>

<mosaic_0001>
module attributes {stable_mosaic.version = 11 : i64} {
  func.func @_mlp_kernel(%arg0: i32, %arg1: memref<128x32xf32, #tpu.memory_space<vmem>>, %arg2: memref<32x512xbf16, #tpu.memory_space<vmem>>, %arg3: memref<1x512xf32, #tpu.memory_space<vmem>>, %arg4: memref<512x256xbf16, #tpu.memory_space<vmem>>, %arg5: memref<1x256xf32, #tpu.memory_space<vmem>>, %arg6: memref<256x128xbf16, #tpu.memory_space<vmem>>, %arg7: memref<1x128xf32, #tpu.memory_space<vmem>>, %arg8: memref<128x128xbf16, #tpu.memory_space<vmem>>, %arg9: memref<1x128xf32, #tpu.memory_space<vmem>>, %arg10: memref<128x128xbf16, #tpu.memory_space<vmem>>, %arg11: memref<1x128xf32, #tpu.memory_space<vmem>>, %arg12: memref<128x128xf32, #tpu.memory_space<vmem>>) attributes {dimension_semantics = [#tpu.dimension_semantics<parallel>], iteration_bounds = array<i64: 2>, scalar_prefetch = 0 : i64, scratch_operands = 0 : i64, tpu.core_type = #tpu.core_type<tc>, window_params = [{transform_indices = @transform_0, window_bounds = array<i64: 128, 32>}, {pipeline_mode = #tpu.pipeline_mode<synchronous>, transform_indices = @transform_1, window_bounds = array<i64: 32, 512>}, {pipeline_mode = #tpu.pipeline_mode<synchronous>, transform_indices = @transform_2, window_bounds = array<i64: 1, 512>}, {pipeline_mode = #tpu.pipeline_mode<synchronous>, transform_indices = @transform_3, window_bounds = array<i64: 512, 256>}, {pipeline_mode = #tpu.pipeline_mode<synchronous>, transform_indices = @transform_4, window_bounds = array<i64: 1, 256>}, {pipeline_mode = #tpu.pipeline_mode<synchronous>, transform_indices = @transform_5, window_bounds = array<i64: 256, 128>}, {pipeline_mode = #tpu.pipeline_mode<synchronous>, transform_indices = @transform_6, window_bounds = array<i64: 1, 128>}, {pipeline_mode = #tpu.pipeline_mode<synchronous>, transform_indices = @transform_7, window_bounds = array<i64: 128, 128>}, {pipeline_mode = #tpu.pipeline_mode<synchronous>, transform_indices = @transform_8, window_bounds = array<i64: 1, 128>}, {pipeline_mode = #tpu.pipeline_mode<synchronous>, transform_indices = @transform_9, window_bounds = array<i64: 128, 128>}, {pipeline_mode = #tpu.pipeline_mode<synchronous>, transform_indices = @transform_10, window_bounds = array<i64: 1, 128>}, {transform_indices = @transform_11, window_bounds = array<i64: 128, 128>}]} {
    %c0 = arith.constant 0 : index
    %c0_0 = arith.constant 0 : index
    %0 = vector.load %arg1[%c0, %c0_0] : memref<128x32xf32, #tpu.memory_space<vmem>>, vector<128x32xf32>
    %1 = arith.truncf %0 : vector<128x32xf32> to vector<128x32xbf16>
    %c0_1 = arith.constant 0 : index
    %c0_2 = arith.constant 0 : index
    %2 = vector.load %arg2[%c0_1, %c0_2] : memref<32x512xbf16, #tpu.memory_space<vmem>>, vector<32x512xbf16>
    %cst = arith.constant dense<0.000000e+00> : vector<128x512xf32>
    %3 = tpu.matmul %1, %2, %cst {dimension_numbers = #tpu.dot_dimension_numbers<[1], [0], [0], [1], [0, 0, 1, 1], [], []>} : vector<128x32xbf16>, vector<32x512xbf16>, vector<128x512xf32> -> vector<128x512xf32>
    %c0_3 = arith.constant 0 : index
    %c0_4 = arith.constant 0 : index
    %4 = vector.load %arg3[%c0_3, %c0_4] : memref<1x512xf32, #tpu.memory_space<vmem>>, vector<1x512xf32>
    %5 = vector.broadcast %4 : vector<1x512xf32> to vector<128x512xf32>
    %6 = arith.addf %3, %5 : vector<128x512xf32>
    %cst_5 = arith.constant 0.000000e+00 : f32
    %7 = vector.broadcast %cst_5 : f32 to vector<128x512xf32>
    %8 = arith.maximumf %6, %7 : vector<128x512xf32>
    %9 = arith.truncf %8 : vector<128x512xf32> to vector<128x512xbf16>
    %c0_6 = arith.constant 0 : index
    %c0_7 = arith.constant 0 : index
    %10 = vector.load %arg4[%c0_6, %c0_7] : memref<512x256xbf16, #tpu.memory_space<vmem>>, vector<512x256xbf16>
    %cst_8 = arith.constant dense<0.000000e+00> : vector<128x256xf32>
    %11 = tpu.matmul %9, %10, %cst_8 {dimension_numbers = #tpu.dot_dimension_numbers<[1], [0], [0], [1], [0, 0, 1, 1], [], []>} : vector<128x512xbf16>, vector<512x256xbf16>, vector<128x256xf32> -> vector<128x256xf32>
    %c0_9 = arith.constant 0 : index
    %c0_10 = arith.constant 0 : index
    %12 = vector.load %arg5[%c0_9, %c0_10] : memref<1x256xf32, #tpu.memory_space<vmem>>, vector<1x256xf32>
    %13 = vector.broadcast %12 : vector<1x256xf32> to vector<128x256xf32>
    %14 = arith.addf %11, %13 : vector<128x256xf32>
    %cst_11 = arith.constant 0.000000e+00 : f32
    %15 = vector.broadcast %cst_11 : f32 to vector<128x256xf32>
    %16 = arith.maximumf %14, %15 : vector<128x256xf32>
    %17 = arith.truncf %16 : vector<128x256xf32> to vector<128x256xbf16>
    %c0_12 = arith.constant 0 : index
    %c0_13 = arith.constant 0 : index
    %18 = vector.load %arg6[%c0_12, %c0_13] : memref<256x128xbf16, #tpu.memory_space<vmem>>, vector<256x128xbf16>
    %cst_14 = arith.constant dense<0.000000e+00> : vector<128x128xf32>
    %19 = tpu.matmul %17, %18, %cst_14 {dimension_numbers = #tpu.dot_dimension_numbers<[1], [0], [0], [1], [0, 0, 1, 1], [], []>} : vector<128x256xbf16>, vector<256x128xbf16>, vector<128x128xf32> -> vector<128x128xf32>
    %c0_15 = arith.constant 0 : index
    %c0_16 = arith.constant 0 : index
    %20 = vector.load %arg7[%c0_15, %c0_16] : memref<1x128xf32, #tpu.memory_space<vmem>>, vector<1x128xf32>
    %21 = vector.broadcast %20 : vector<1x128xf32> to vector<128x128xf32>
    %22 = arith.addf %19, %21 : vector<128x128xf32>
    %cst_17 = arith.constant 0.000000e+00 : f32
    %23 = vector.broadcast %cst_17 : f32 to vector<128x128xf32>
    %24 = arith.maximumf %22, %23 : vector<128x128xf32>
    %25 = arith.truncf %24 : vector<128x128xf32> to vector<128x128xbf16>
    %c0_18 = arith.constant 0 : index
    %c0_19 = arith.constant 0 : index
    %26 = vector.load %arg8[%c0_18, %c0_19] : memref<128x128xbf16, #tpu.memory_space<vmem>>, vector<128x128xbf16>
    %cst_20 = arith.constant dense<0.000000e+00> : vector<128x128xf32>
    %27 = tpu.matmul %25, %26, %cst_20 {dimension_numbers = #tpu.dot_dimension_numbers<[1], [0], [0], [1], [0, 0, 1, 1], [], []>} : vector<128x128xbf16>, vector<128x128xbf16>, vector<128x128xf32> -> vector<128x128xf32>
    %c0_21 = arith.constant 0 : index
    %c0_22 = arith.constant 0 : index
    %28 = vector.load %arg9[%c0_21, %c0_22] : memref<1x128xf32, #tpu.memory_space<vmem>>, vector<1x128xf32>
    %29 = vector.broadcast %28 : vector<1x128xf32> to vector<128x128xf32>
    %30 = arith.addf %27, %29 : vector<128x128xf32>
    %cst_23 = arith.constant 0.000000e+00 : f32
    %31 = vector.broadcast %cst_23 : f32 to vector<128x128xf32>
    %32 = arith.maximumf %30, %31 : vector<128x128xf32>
    %33 = arith.truncf %32 : vector<128x128xf32> to vector<128x128xbf16>
    %c0_24 = arith.constant 0 : index
    %c0_25 = arith.constant 0 : index
    %34 = vector.load %arg10[%c0_24, %c0_25] : memref<128x128xbf16, #tpu.memory_space<vmem>>, vector<128x128xbf16>
    %cst_26 = arith.constant dense<0.000000e+00> : vector<128x128xf32>
    %35 = tpu.matmul %33, %34, %cst_26 {dimension_numbers = #tpu.dot_dimension_numbers<[1], [0], [0], [1], [0, 0, 1, 1], [], []>} : vector<128x128xbf16>, vector<128x128xbf16>, vector<128x128xf32> -> vector<128x128xf32>
    %c0_27 = arith.constant 0 : index
    %c0_28 = arith.constant 0 : index
    %36 = vector.load %arg11[%c0_27, %c0_28] : memref<1x128xf32, #tpu.memory_space<vmem>>, vector<1x128xf32>
    %37 = vector.broadcast %36 : vector<1x128xf32> to vector<128x128xf32>
    %38 = arith.addf %35, %37 : vector<128x128xf32>
    %cst_29 = arith.constant 0.000000e+00 : f32
    %39 = vector.broadcast %cst_29 : f32 to vector<128x128xf32>
    %40 = arith.subf %39, %38 : vector<128x128xf32>
    %41 = math.exp %40 : vector<128x128xf32>
    %cst_30 = arith.constant 1.000000e+00 : f32
    %42 = vector.broadcast %cst_30 : f32 to vector<128x128xf32>
    %43 = arith.addf %42, %41 : vector<128x128xf32>
    %44 = tpu.reciprocal %43 : vector<128x128xf32> -> vector<128x128xf32>
    %c0_31 = arith.constant 0 : index
    %c0_32 = arith.constant 0 : index
    %45 = vector.load %arg12[%c0_31, %c0_32] : memref<128x128xf32, #tpu.memory_space<vmem>>, vector<128x128xf32>
    tpu.vector_store %arg12[%c0_31, %c0_32], %44 {strides = array<i32>} : memref<128x128xf32, #tpu.memory_space<vmem>>, vector<128x128xf32>,
    return
  }
  func.func @transform_0(%arg0: i32) -> (i32, i32) {
    %c0_i32 = arith.constant 0 : i32
    %c0_i32_0 = arith.constant 0 : i32
    return %arg0, %c0_i32 : i32, i32
  }
  func.func @transform_1(%arg0: i32) -> (i32, i32) {
    %c0_i32 = arith.constant 0 : i32
    %c0_i32_0 = arith.constant 0 : i32
    %c0_i32_1 = arith.constant 0 : i32
    return %c0_i32, %c0_i32_0 : i32, i32
  }
  func.func @transform_2(%arg0: i32) -> (i32, i32) {
    %c0_i32 = arith.constant 0 : i32
    %c0_i32_0 = arith.constant 0 : i32
    %c0_i32_1 = arith.constant 0 : i32
    return %c0_i32, %c0_i32_0 : i32, i32
  }
  func.func @transform_3(%arg0: i32) -> (i32, i32) {
    %c0_i32 = arith.constant 0 : i32
    %c0_i32_0 = arith.constant 0 : i32
    %c0_i32_1 = arith.constant 0 : i32
    return %c0_i32, %c0_i32_0 : i32, i32
  }
  func.func @transform_4(%arg0: i32) -> (i32, i32) {
    %c0_i32 = arith.constant 0 : i32
    %c0_i32_0 = arith.constant 0 : i32
    %c0_i32_1 = arith.constant 0 : i32
    return %c0_i32, %c0_i32_0 : i32, i32
  }
  func.func @transform_5(%arg0: i32) -> (i32, i32) {
    %c0_i32 = arith.constant 0 : i32
    %c0_i32_0 = arith.constant 0 : i32
    %c0_i32_1 = arith.constant 0 : i32
    return %c0_i32, %c0_i32_0 : i32, i32
  }
  func.func @transform_6(%arg0: i32) -> (i32, i32) {
    %c0_i32 = arith.constant 0 : i32
    %c0_i32_0 = arith.constant 0 : i32
    %c0_i32_1 = arith.constant 0 : i32
    return %c0_i32, %c0_i32_0 : i32, i32
  }
  func.func @transform_7(%arg0: i32) -> (i32, i32) {
    %c0_i32 = arith.constant 0 : i32
    %c0_i32_0 = arith.constant 0 : i32
    %c0_i32_1 = arith.constant 0 : i32
    return %c0_i32, %c0_i32_0 : i32, i32
  }
  func.func @transform_8(%arg0: i32) -> (i32, i32) {
    %c0_i32 = arith.constant 0 : i32
    %c0_i32_0 = arith.constant 0 : i32
    %c0_i32_1 = arith.constant 0 : i32
    return %c0_i32, %c0_i32_0 : i32, i32
  }
  func.func @transform_9(%arg0: i32) -> (i32, i32) {
    %c0_i32 = arith.constant 0 : i32
    %c0_i32_0 = arith.constant 0 : i32
    %c0_i32_1 = arith.constant 0 : i32
    return %c0_i32, %c0_i32_0 : i32, i32
  }
  func.func @transform_10(%arg0: i32) -> (i32, i32) {
    %c0_i32 = arith.constant 0 : i32
    %c0_i32_0 = arith.constant 0 : i32
    %c0_i32_1 = arith.constant 0 : i32
    return %c0_i32, %c0_i32_0 : i32, i32
  }
  func.func @transform_11(%arg0: i32) -> (i32, i32) {
    %c0_i32 = arith.constant 0 : i32
    %c0_i32_0 = arith.constant 0 : i32
    return %arg0, %c0_i32 : i32, i32
  }
}

</mosaic_0001>

<bundles_post_ra>
// kernel: mlp_forward.1
= control target key start
LH: loop header
LB: loop body
LE: loop exit
PB: predicated region body
PF: predicated region fallthrough
CT: control target
= control target key end

     0   :  { %16 = vsyncpa [#allocation3], 0  ;;  %s3701_s0 = inlined_call_operand.vmem [shape: f32[256,32], index: 0, kind: input, shape index: {}]   ;;  %s3702_s1 = inlined_call_operand.vmem [shape: bf16[32,512], index: 1, kind: input, shape index: {}]   ;;  %s3703_s2 = inlined_call_operand.vmem [shape: f32[1,512], index: 2, kind: input, shape index: {}]   ;;  %s3704_s3 = inlined_call_operand.vmem [shape: bf16[512,256], index: 3, kind: input, shape index: {}]   ;;  %s3705_s4 = inlined_call_operand.vmem [shape: f32[1,256], index: 4, kind: input, shape index: {}]   ;;  %s3706_s5 = inlined_call_operand.vmem [shape: bf16[256,128], index: 5, kind: input, shape index: {}]   ;;  %s3707_s6 = inlined_call_operand.vmem [shape: f32[1,128], index: 6, kind: input, shape index: {}]   ;;  %s3708_s7 = inlined_call_operand.hbm [shape: bf16[128,128], index: 7, kind: input, shape index: {}]   ;;  %s3709_s8 = inlined_call_operand.vmem [shape: f32[1,128], index: 8, kind: input, shape index: {}]   ;;  %s3710_s9 = inlined_call_operand.hbm [shape: bf16[128,128], index: 9, kind: input, shape index: {}]   ;;  %s3711_s10 = inlined_call_operand.vmem [shape: f32[1,128], index: 10, kind: input, shape index: {}]   ;;  %s3712_s11 = inlined_call_operand.vmem [shape: f32[256,128], index: 11, kind: output, shape index: {}]  }
   0x1   :  { %17 = vsyncpa [#allocation5], 0  ;;  %s3057_s17 = smov 0  }
   0x2 LB: > { %s2322_s18 = sadd.s32 4294967295, %s2990_s17   ;;  %p2324_p0 = scmp.ge.s32.totalorder %s2990_s17, 1  ;;  %s2990_s17 = sphi %s3057_s17, %s23_s17  }
   0x3   : > { %p290_p1 = scmp.lt.s32.totalorder %s2990_s17, 3  ;;  %s2992_s19 = smov [#allocation2]  }
   0x4   : > { %s320_s20 = sshll.u32 %s2992_s19, 4  ;;  %p3071_p3 = scmp.eq.s32.totalorder %s2322_s18, 0  ;;  %s321_s20 = int_to_ptr.vmem [resolvable:$true] %s320_s20 }
   0x5   : > { %p3065_p2 = pnand %p2324_p0, %p290_p1  ;;  %s2993_s23 = smov [#allocation4]  }
   0x6   : > { %s3717_s22 = scalar_select %p3071_p3, 1, 0 }
   0x7   : > { %s3716_s21 = scalar_select %p3065_p2, 1, 0 }
   0x8   : > { %p2692_p4 = pneg %p3065_p2  ;;  %s336_s24 = sshll.u32 %s2993_s23, 4  ;;  %s3083_s24 = int_to_ptr.vmem [resolvable:$true] %s336_s24 }
   0x9   : > { %s2920_s28 = scalar_lea.hbm %s3708_s7, 1024 }
   0xa   : > { %p3079_p5 = pnand %p3071_p3, %p2692_p4  ;;  %p2921_p6 = scmp.ne.s32.totalorder %s3708_s7, %s2920_s28 }
   0xb   : > { %p2927_p10 = scmp.lt.u32.totalorder %s2920_s28, %s3708_s7 }
   0xc   : > { %p2922_p7 = pneg %p3079_p5 }
   0xe   : > { %p2923_p8 = pnand %p2922_p7, %p2921_p6 }
  0x10   : > { %p2924_p9 = pneg %p2923_p8 }
  0x12   : > { %p2929_p11 = pnand %p2927_p10, %p2924_p9 }
  0x14   : > { %2932 = shalt.err (!%p2929_p11)
}
  0x15   : > { %s2933_s14 = scalar_lea.vmem %s321_s20, 1024  ;;  %p2941_p1 = scmp.lt.s32.totalorder %s321_s20, %s321_s20 }
  0x16   : > { %p2934_p12 = scmp.ne.s32.totalorder %s321_s20, %s2933_s14  ;;  %p2942_p4 = scmp.lt.s32.totalorder %s2933_s14, %s2933_s14 }
  0x18   : > { %p2936_p13 = pnand %p2934_p12, %p2922_p7  ;;  %p2943_p3 = por %p2942_p4, %p2941_p1 }
  0x1a   : > { %p2937_p0 = pneg %p2936_p13 }
  0x1c   : > { %p2944_p2 = pnand %p2943_p3, %p2937_p0 }
  0x1e   : > { %2947 = shalt.err (!%p2944_p2)
}
  0x1f   : > { %s2994_s15 = smov 64   ;;  %s2995_s16 = smov 4  }
  0x20   : > { %2695 = dma.hbm_to_vmem [thread:$0]  (!%p3079_p5), %s3708_s7, 1024, %s321_s20, [#allocation3], %s2994_s15, %s2994_s15, %s2995_s16  }
  0x21   : > { %s2948_s28 = scalar_lea.hbm %s3710_s9, 1024 }
  0x22   : > { %p2949_p6 = scmp.ne.s32.totalorder %s3710_s9, %s2948_s28  ;;  %p2955_p8 = scmp.lt.u32.totalorder %s2948_s28, %s3710_s9 }
  0x24   : > { %p2951_p2 = pnand %p2949_p6, %p2922_p7 }
  0x26   : > { %p2952_p3 = pneg %p2951_p2 }
  0x28   : > { %p2957_p9 = pnand %p2955_p8, %p2952_p3 }
  0x2a   : > { %2960 = shalt.err (!%p2957_p9)
}
  0x2b   : > { %s2961_s20 = scalar_lea.vmem %s3083_s24, 1024  ;;  %p2969_p13 = scmp.lt.s32.totalorder %s3083_s24, %s3083_s24 }
  0x2c   : > { %p2962_p10 = scmp.ne.s32.totalorder %s3083_s24, %s2961_s20  ;;  %p2970_p0 = scmp.lt.s32.totalorder %s2961_s20, %s2961_s20 }
  0x2e   : > { %p2964_p11 = pnand %p2962_p10, %p2922_p7  ;;  %p2971_p1 = por %p2970_p0, %p2969_p13 }
  0x30   : > { %p2965_p12 = pneg %p2964_p11 }
  0x32   : > { %p2972_p4 = pnand %p2971_p1, %p2965_p12 }
  0x34   : > { %2975 = shalt.err (!%p2972_p4)
}
  0x35   : > { %2698 = dma.hbm_to_vmem [thread:$0]  (!%p3079_p5), %s3710_s9, 1024, %s3083_s24, [#allocation5], %s2994_s15, %s2994_s15, %s2995_s16  }
  0x36   : > { %p3719_p6 = scmp.ne.s32.totalorder %s3716_s21, 0 }
  0x37   : > { %p3720_p2 = scmp.ne.s32.totalorder (!%p3719_p6), %s3717_s22, 0 }
  0x38   : > { %364 = sbr.rel (%p3719_p6) target bundleno = 1334 (0x536), region = 64 }
  0x3f   : > { %2981 = dma.done.wait (%p3720_p2), [#allocation3], 1024  }
  0x40   : > { %2983 = vsyncadd (%p3720_p2), [#allocation3], 4294966272 }
  0x41   : > { %2985 = dma.done.wait (%p3720_p2), [#allocation5], 1024  }
  0x42   : > { %2987 = vsyncadd (%p3720_p2), [#allocation5], 4294966272  ;;  %s2331_s25 = sshll.u32 %s2322_s18, 4  ;;  %v2996_v0 = vmov 0   ;;  %v2716_v1 = vld [vmem:[%s3702_s1 + $0x4] ss:$16 sps:$4 sm:$0xff]  }
  0x43   : > { %572 = vmatprep.mubr.bf16.mxu0 %v2996_v0  ;;  %p409_p5 = scmp.lt.s32.totalorder %s2331_s25, 31  ;;  %685 = vmatprep.mubr.bf16.mxu1 %v2996_v0  ;;  %v2718_v2 = vld [vmem:[%s3702_s1] ss:$16 sps:$4 sm:$0xff]   ;;  %v2719_v3 = vld [vmem:[%s3702_s1 + $0x24] ss:$16 sps:$4 sm:$0xff]   ;;  %vm515_vm0 = vcmask 261120  }
  0x44   : > { %540 = vmatprep.subr.bf16.mxu0 %v2716_v1  ;;  %v2721_v4 = vld [vmem:[%s3702_s1 + $0x20] ss:$16 sps:$4 sm:$0xff]   ;;  %v2722_v8 = vld [vmem:[%s3702_s1 + $0xc] ss:$16 sps:$4 sm:$0xff]   ;;  %v2724_v9 = vld [vmem:[%s3702_s1 + $0x8] ss:$16 sps:$4 sm:$0xff]  }
  0x45   : > { %s3722_s25 = smov (!%p409_p5, %s2331_s25), 31  ;;  %541 = vmatpush1.bf16.msra.mxu0 %v2718_v2  ;;  %653 = vmatprep.subr.bf16.mxu1 %v2722_v8  ;;  %v2725_v12 = vld [vmem:[%s3702_s1 + $0x2c] ss:$16 sps:$4 sm:$0xff]   ;;  %v2727_v13 = vld [vmem:[%s3702_s1 + $0x28] ss:$16 sps:$4 sm:$0xff]   ;;  %v455_v2 = vlaneseq }
  0x46   : > { %s2332_s21 = sshll.u32 %s3722_s25, 3  ;;  %542 = vmatprep.subr.bf16.mxu0 %v2719_v3  ;;  %654 = vmatpush1.bf16.msra.mxu1 %v2724_v9  ;;  %v2728_v14 = vld [vmem:[%s3704_s3] ss:$8 sps:$4 sm:$0xff]   ;;  %v2730_v15 = vld [vmem:[%s3704_s3 + $0x4] ss:$8 sps:$4 sm:$0xff]  }
  0x47   : > { %s3157_s18 = scalar_lea.vmem %s3701_s0, %s2332_s21  ;;  %655 = vmatprep.subr.bf16.mxu1 %v2725_v12  ;;  %v2733_v16 = vld [vmem:[%s3704_s3 + $0x14] ss:$8 sps:$4 sm:$0xff]   ;;  %v2731_v18 = vld [vmem:[%s3704_s3 + $0x10] ss:$8 sps:$4 sm:$0xff]   ;;  %v2736_v19 = vld [vmem:[%s3704_s3 + $0x24] ss:$8 sps:$4 sm:$0xff]   ;;  %s3672_s22 = scalar_lea.vmem %s3712_s11, %s2332_s21 }
  0x48   : > { %v421_v5 = vld [vmem:[%s3157_s18] sm:$0xff]  ;;  %v422_v6 = vld [vmem:[%s3157_s18 + $0x8] sm:$0xff]  ;;  %v423_v10 = vld [vmem:[%s3157_s18 + $0x10] sm:$0xff]  ;;  %v3325_v3 = vshrl.u32 %v455_v2, 7 }
  0x49   : > { %v437_v7 = vpack.c.bf16 %v422_v6, %v421_v5  ;;  %543 = vmatpush1.bf16.msra.mxu0 %v2721_v4  ;;  %v424_v11 = vld [vmem:[%s3157_s18 + $0x18] sm:$0xff]  ;;  %v425_v20 = vld [vmem:[%s3157_s18 + $0x20] sm:$0xff]  ;;  %v426_v21 = vld [vmem:[%s3157_s18 + $0x28] sm:$0xff] }
  0x4a   : > { %1258 = vmatprep.subr.bf16.mxu0 %v2730_v15  ;;  %v438_v17 = vpack.c.bf16 %v424_v11, %v423_v10  ;;  %656 = vmatpush1.bf16.msra.mxu1 %v2727_v13  ;;  %v2734_v22 = vld [vmem:[%s3704_s3 + $0x20] ss:$8 sps:$4 sm:$0xff]   ;;  %v2739_v23 = vld [vmem:[%s3704_s3 + $0x34] ss:$8 sps:$4 sm:$0xff]   ;;  %v439_v24 = vpack.c.bf16 %v426_v21, %v425_v20  ;;  %v2737_v25 = vld [vmem:[%s3704_s3 + $0x30] ss:$8 sps:$4 sm:$0xff]  }
  0x4b   : > { %v2742_v26 = vld [vmem:[%s3704_s3 + $0x44] ss:$8 sps:$4 sm:$0xff]   ;;  %v427_v27 = vld [vmem:[%s3157_s18 + $0x30] sm:$0xff]  ;;  %v428_v28 = vld [vmem:[%s3157_s18 + $0x38] sm:$0xff]  ;;  %v457_v4 = vsub.s32 0, %v3325_v3  ;;  %v461_v6 = vsub.s32 1, %v3325_v3 }
  0x4c   : > { %2343 = vmatmul.mubr.msk.bf16.vlgmr.msra.gmra.mrb[0].mxu0 %vm515_vm0, %v437_v7  ;;  %v2740_v29 = vld [vmem:[%s3704_s3 + $0x40] ss:$8 sps:$4 sm:$0xff]   ;;  %v2745_v30 = vld [vmem:[%s3704_s3 + $0x54] ss:$8 sps:$4 sm:$0xff]   ;;  %v440_v31 = vpack.c.bf16 %v428_v28, %v427_v27  ;;  %v2743_v32 = vld [vmem:[%s3704_s3 + $0x50] ss:$8 sps:$4 sm:$0xff]  }
  0x4d   : > { %582 = vmatprep.mubr.bf16.mxu0 %v2996_v0  ;;  %1259 = vmatpush1.bf16.msra.mxu0 %v2728_v14  ;;  %v2748_v33 = vld [vmem:[%s3704_s3 + $0x64] ss:$8 sps:$4 sm:$0xff]   ;;  %v2746_v36 = vld [vmem:[%s3704_s3 + $0x60] ss:$8 sps:$4 sm:$0xff]   ;;  %v2751_v37 = vld [vmem:[%s3704_s3 + $0x74] ss:$8 sps:$4 sm:$0xff]  }
  0x4e   : > { %1260 = vmatprep.subr.bf16.mxu0 %v2733_v16  ;;  %2351 = vmatmul.mubr.msk.bf16.vlgmr.msra.gmra.mrb[0].mxu1 %vm515_vm0, %v437_v7  ;;  %v429_v34 = vld [vmem:[%s3157_s18 + $0x40] sm:$0xff]  ;;  %v430_v35 = vld [vmem:[%s3157_s18 + $0x48] sm:$0xff]  ;;  %v2749_v39 = vld [vmem:[%s3704_s3 + $0x70] ss:$8 sps:$4 sm:$0xff]   ;;  %v465_v12 = vsub.s32 2, %v3325_v3  ;;  %v469_v15 = vsub.s32 3, %v3325_v3 }
  0x4f   : > { %695 = vmatprep.mubr.bf16.mxu1 %v2996_v0  ;;  %v441_v38 = vpack.c.bf16 %v430_v35, %v429_v34  ;;  %v2754_v40 = vld [vmem:[%s3704_s3 + $0x84] ss:$8 sps:$4 sm:$0xff]   ;;  %v431_v41 = vld [vmem:[%s3157_s18 + $0x50] sm:$0xff]  ;;  %v432_v42 = vld [vmem:[%s3157_s18 + $0x58] sm:$0xff] }
  0x50   : > { %v2752_v43 = vld [vmem:[%s3704_s3 + $0x80] ss:$8 sps:$4 sm:$0xff]   ;;  %v2757_v44 = vld [vmem:[%s3704_s3 + $0x94] ss:$8 sps:$4 sm:$0xff]   ;;  %v442_v45 = vpack.c.bf16 %v432_v42, %v431_v41  ;;  %v2755_v46 = vld [vmem:[%s3704_s3 + $0x90] ss:$8 sps:$4 sm:$0xff]  }
  0x51   : > { %1261 = vmatpush1.bf16.msra.mxu0 %v2731_v18  ;;  %v2760_v47 = vld [vmem:[%s3704_s3 + $0xa4] ss:$8 sps:$4 sm:$0xff]   ;;  %v2758_v50 = vld [vmem:[%s3704_s3 + $0xa0] ss:$8 sps:$4 sm:$0xff]   ;;  %v2763_v51 = vld [vmem:[%s3704_s3 + $0xb4] ss:$8 sps:$4 sm:$0xff]  }
  0x52   : > { %1262 = vmatprep.subr.bf16.mxu0 %v2736_v19  ;;  %v433_v48 = vld [vmem:[%s3157_s18 + $0x60] sm:$0xff]  ;;  %v434_v49 = vld [vmem:[%s3157_s18 + $0x68] sm:$0xff]  ;;  %v2761_v53 = vld [vmem:[%s3704_s3 + $0xb0] ss:$8 sps:$4 sm:$0xff]  }
  0x53   : > { %v443_v52 = vpack.c.bf16 %v434_v49, %v433_v48  ;;  %v2766_v54 = vld [vmem:[%s3704_s3 + $0xc4] ss:$8 sps:$4 sm:$0xff]   ;;  %v435_v55 = vld [vmem:[%s3157_s18 + $0x70] sm:$0xff]  ;;  %v436_v56 = vld [vmem:[%s3157_s18 + $0x78] sm:$0xff] }
  0x54   : > { %2344 = vmatmul.mubr.msk.bf16.gmra.mrb[4].mxu0 %vm515_vm0, %v438_v17  ;;  %v2764_v57 = vld [vmem:[%s3704_s3 + $0xc0] ss:$8 sps:$4 sm:$0xff]   ;;  %v2769_v58 = vld [vmem:[%s3704_s3 + $0xd4] ss:$8 sps:$4 sm:$0xff]   ;;  %v444_v59 = vpack.c.bf16 %v436_v56, %v435_v55  ;;  %v2767_v60 = vld [vmem:[%s3704_s3 + $0xd0] ss:$8 sps:$4 sm:$0xff]  }
  0x55   : > { %592 = vmatprep.mubr.bf16.mxu0 %v2996_v0  ;;  %1263 = vmatpush1.bf16.msra.mxu0 %v2734_v22  ;;  %v2772_v61 = vld [vmem:[%s3704_s3 + $0xe4] ss:$8 sps:$4 sm:$0xff]   ;;  %v2770_v62 = vld [vmem:[%s3704_s3 + $0xe0] ss:$8 sps:$4 sm:$0xff]   ;;  %v2775_v63 = vld [vmem:[%s3704_s3 + $0xf4] ss:$8 sps:$4 sm:$0xff]  }
  0x56   : > { %1264 = vmatprep.subr.bf16.mxu0 %v2739_v23  ;;  %2352 = vmatmul.mubr.msk.bf16.gmra.mrb[4].mxu1 %vm515_vm0, %v438_v17  ;;  %v2778_v1 = vld [vmem:[%s3704_s3 + $0x104] ss:$8 sps:$4 sm:$0xff]   ;;  %v453_v5 = vld [vmem:[%s3703_s2] sm:$0xf] }
  0x57   : > { %705 = vmatprep.mubr.bf16.mxu1 %v2996_v0  ;;  %v3334_v7 = vrot.slane %v453_v5, %v457_v4  ;;  %v3338_v8 = vrot.slane %v453_v5, %v461_v6  ;;  %v2824_v18 = vld [vmem:[%s3706_s5 + $0x40] sm:$0xff]   ;;  %v2826_v20 = vld [vmem:[%s3706_s5 + $0x48] sm:$0xff]   ;;  %v3357_v27 = vrot.slane %v453_v5, %v469_v15 }
  0x58   : > { %v2825_v19 = vld [vmem:[%s3706_s5] sm:$0xff]   ;;  %2460 = vmatprep.subr.bf16.mxu1 %v2824_v18  ;;  %v2827_v28 = vld [vmem:[%s3706_s5 + $0x8] sm:$0xff]  }
  0x59   : > { %1265 = vmatpush1.bf16.msra.mxu0 %v2737_v25  ;;  %2461 = vmatpush3.bf16.msra.mxu1 %v2825_v19 }
  0x5a   : > { %1266 = vmatprep.subr.bf16.mxu0 %v2742_v26  ;;  %2462 = vmatprep.subr.bf16.mxu1 %v2826_v20 }
  0x5c   : > { %2345 = vmatmul.mubr.msk.bf16.gmra.mrb[8].mxu0 %vm515_vm0, %v439_v24 }
  0x5d   : > { %602 = vmatprep.mubr.bf16.mxu0 %v2996_v0  ;;  %1267 = vmatpush1.bf16.msra.mxu0 %v2740_v29 }
  0x5e   : > { %1268 = vmatprep.subr.bf16.mxu0 %v2745_v30  ;;  %2353 = vmatmul.mubr.msk.bf16.gmra.mrb[8].mxu1 %vm515_vm0, %v439_v24  ;;  %v3355_v24 = vrot.slane %v453_v5, %v465_v12  ;;  %v2828_v30 = vld [vmem:[%s3706_s5 + $0x50] sm:$0xff]  }
  0x5f   : > { %715 = vmatprep.mubr.bf16.mxu1 %v2996_v0  ;;  %2463 = vmatpush3.bf16.msra.mxu1 %v2827_v28 }
  0x60   : > { %2464 = vmatprep.subr.bf16.mxu1 %v2828_v30 }
  0x61   : > { %1269 = vmatpush1.bf16.msra.mxu0 %v2743_v32 }
  0x62   : > { %1270 = vmatprep.subr.bf16.mxu0 %v2748_v33  ;;  %v2776_v33 = vld [vmem:[%s3704_s3 + $0x100] ss:$8 sps:$4 sm:$0xff]  }
  0x64   : > { %2346 = vmatmul.mubr.msk.bf16.gmra.mrb[12].mxu0 %vm515_vm0, %v440_v31 }
  0x65   : > { %612 = vmatprep.mubr.bf16.mxu0 %v2996_v0  ;;  %1271 = vmatpush1.bf16.msra.mxu0 %v2746_v36 }
  0x66   : > { %1272 = vmatprep.subr.bf16.mxu0 %v2751_v37  ;;  %2354 = vmatmul.mubr.msk.bf16.gmra.mrb[12].mxu1 %vm515_vm0, %v440_v31  ;;  %v2781_v37 = vld [vmem:[%s3704_s3 + $0x114] ss:$8 sps:$4 sm:$0xff]  }
  0x67   : > { %725 = vmatprep.mubr.bf16.mxu1 %v2996_v0 }
  0x69   : > { %1273 = vmatpush1.bf16.msra.mxu0 %v2749_v39 }
  0x6a   : > { %1274 = vmatprep.subr.bf16.mxu0 %v2754_v40 }
  0x6c   : > { %2347 = vmatmul.mubr.msk.bf16.gmra.mrb[16].mxu0 %vm515_vm0, %v441_v38 }
  0x6d   : > { %622 = vmatprep.mubr.bf16.mxu0 %v2996_v0  ;;  %1275 = vmatpush1.bf16.msra.mxu0 %v2752_v43 }
  0x6e   : > { %1276 = vmatprep.subr.bf16.mxu0 %v2757_v44  ;;  %2355 = vmatmul.mubr.msk.bf16.gmra.mrb[16].mxu1 %vm515_vm0, %v441_v38  ;;  %v2829_v44 = vld [vmem:[%s3706_s5 + $0x10] sm:$0xff]  }
  0x6f   : > { %735 = vmatprep.mubr.bf16.mxu1 %v2996_v0  ;;  %2465 = vmatpush3.bf16.msra.mxu1 %v2829_v44  ;;  %v2836_v44 = vld [vmem:[%s3706_s5 + $0x70] sm:$0xff]  }
  0x71   : > { %1277 = vmatpush1.bf16.msra.mxu0 %v2755_v46 }
  0x72   : > { %1278 = vmatprep.subr.bf16.mxu0 %v2760_v47 }
  0x74   : > { %2348 = vmatmul.mubr.msk.bf16.gmra.mrb[20].mxu0 %vm515_vm0, %v442_v45 }
  0x75   : > { %632 = vmatprep.mubr.bf16.mxu0 %v2996_v0  ;;  %1279 = vmatpush1.bf16.msra.mxu0 %v2758_v50  ;;  %v2830_v50 = vld [vmem:[%s3706_s5 + $0x58] sm:$0xff]  }
  0x76   : > { %1280 = vmatprep.subr.bf16.mxu0 %v2763_v51  ;;  %2356 = vmatmul.mubr.msk.bf16.gmra.mrb[20].mxu1 %vm515_vm0, %v442_v45 }
  0x77   : > { %745 = vmatprep.mubr.bf16.mxu1 %v2996_v0  ;;  %2466 = vmatprep.subr.bf16.mxu1 %v2830_v50 }
  0x79   : > { %1281 = vmatpush1.bf16.msra.mxu0 %v2761_v53 }
  0x7a   : > { %1282 = vmatprep.subr.bf16.mxu0 %v2766_v54 }
  0x7c   : > { %2349 = vmatmul.mubr.msk.bf16.gmra.mrb[24].mxu0 %vm515_vm0, %v443_v52 }
  0x7d   : > { %642 = vmatprep.mubr.bf16.mxu0 %v2996_v0  ;;  %1283 = vmatpush1.bf16.msra.mxu0 %v2764_v57  ;;  %v2784_v57 = vld [vmem:[%s3704_s3 + $0x124] ss:$8 sps:$4 sm:$0xff]  }
  0x7e   : > { %1284 = vmatprep.subr.bf16.mxu0 %v2769_v58  ;;  %2357 = vmatmul.mubr.msk.bf16.gmra.mrb[24].mxu1 %vm515_vm0, %v443_v52  ;;  %v2779_v52 = vld [vmem:[%s3704_s3 + $0x110] ss:$8 sps:$4 sm:$0xff]  }
  0x7f   : > { %755 = vmatprep.mubr.bf16.mxu1 %v2996_v0  ;;  %v2773_v0 = vld [vmem:[%s3704_s3 + $0xf0] ss:$8 sps:$4 sm:$0xff]  }
  0x81   : > { %1285 = vmatpush1.bf16.msra.mxu0 %v2767_v60 }
  0x82   : > { %1286 = vmatprep.subr.bf16.mxu0 %v2772_v61 }
  0x84   : > { %2350 = vmatmul.mubr.msk.bf16.gmra.mrb[28].mxu0 %vm515_vm0, %v444_v59 }
  0x85   : > { %1287 = vmatpush1.bf16.msra.mxu0 %v2770_v62  ;;  %v2831_v62 = vld [vmem:[%s3706_s5 + $0x18] sm:$0xff]  }
  0x86   : > { %2358 = vmatmul.mubr.msk.bf16.gmra.mrb[28].mxu1 %vm515_vm0, %v444_v59  ;;  %1288 = vmatprep.subr.bf16.mxu0 %v2775_v63 }
  0x87   : > { %2467 = vmatpush3.bf16.msra.mxu1 %v2831_v62 }
  0x89   : > { %1289 = vmatpush1.bf16.msra.mxu0 %v2773_v0 }
  0x8a   : > { %1371 = vmatprep.subr.bf16.mxu0 %v2778_v1  ;;  %v2832_v1 = vld [vmem:[%s3706_s5 + $0x60] sm:$0xff]  }
  0x8b   : > { %2468 = vmatprep.subr.bf16.mxu1 %v2832_v1 }
 0x11f   : > { %v574_v9 = vpop.f32.mrb[0].mxu0 }
 0x120   : > { %v575_v10 = vadd.f32 %v574_v9, %v3334_v7  ;;  %v576_v11 = vpop.f32.mrb[1].mxu0  ;;  %v2782_v9 = vld [vmem:[%s3704_s3 + $0x120] ss:$8 sps:$4 sm:$0xff]  }
 0x121   : > { %v577_v13 = vadd.f32 %v576_v11, %v3338_v8  ;;  %v578_v14 = vpop.f32.mrb[2].mxu0  ;;  %v687_v34 = vpop.f32.mrb[0].mxu1 }
 0x122   : > { %v579_v16 = vadd.f32 %v578_v14, %v3334_v7  ;;  %v580_v17 = vpop.f32.mrb[3].mxu0  ;;  %v766_v22 = vmax.f32 %v575_v10, 0.0  ;;  %v688_v38 = vadd.f32 %v687_v34, %v3355_v24  ;;  %v689_v39 = vpop.f32.mrb[1].mxu1  ;;  %v2787_v14 = vld [vmem:[%s3704_s3 + $0x134] ss:$8 sps:$4 sm:$0xff]  }
 0x123   : > { %v581_v21 = vadd.f32 %v580_v17, %v3338_v8  ;;  %v767_v25 = vmax.f32 %v577_v13, 0.0  ;;  %v690_v42 = vadd.f32 %v689_v39, %v3357_v27  ;;  %v691_v43 = vpop.f32.mrb[2].mxu1 }
 0x124   : > { %v770_v23 = vmax.f32 %v579_v16, 0.0  ;;  %v768_v47 = vmax.f32 %v688_v38, 0.0  ;;  %v692_v48 = vadd.f32 %v691_v43, %v3355_v24  ;;  %v693_v49 = vpop.f32.mrb[3].mxu1 }
 0x125   : > { %v771_v26 = vmax.f32 %v581_v21, 0.0  ;;  %v769_v53 = vmax.f32 %v690_v42, 0.0  ;;  %v694_v54 = vadd.f32 %v693_v49, %v3357_v27  ;;  %v2833_v21 = vld [vmem:[%s3706_s5 + $0x20] sm:$0xff]  }
 0x126   : > { %v830_v29 = vpack.c.bf16 %v770_v23, %v766_v22  ;;  %v772_v58 = vmax.f32 %v692_v48, 0.0  ;;  %2469 = vmatpush3.bf16.msra.mxu1 %v2833_v21 }
 0x127   : > { %v831_v31 = vpack.c.bf16 %v771_v26, %v767_v25  ;;  %v584_v32 = vpop.f32.mrb[4].mxu0  ;;  %v773_v61 = vmax.f32 %v694_v54, 0.0 }
 0x128   : > { %v585_v35 = vadd.f32 %v584_v32, %v3334_v7  ;;  %v586_v36 = vpop.f32.mrb[5].mxu0  ;;  %v3394_v0 = vpack.c.bf16 %v772_v58, %v768_v47  ;;  %v2788_v47 = vld [vmem:[%s3704_s3 + $0x140] ss:$8 sps:$4 sm:$0xff]  }
 0x129   : > { %v587_v40 = vadd.f32 %v586_v36, %v3338_v8  ;;  %v588_v41 = vpop.f32.mrb[6].mxu0  ;;  %1290 = vmatprep.mubr.bf16.mxu0 %v831_v31  ;;  %v3402_v10 = vpack.c.bf16 %v773_v61, %v769_v53  ;;  %v697_v11 = vpop.f32.mrb[4].mxu1  ;;  %v2785_v31 = vld [vmem:[%s3704_s3 + $0x130] ss:$8 sps:$4 sm:$0xff]   ;;  %v2790_v36 = vld [vmem:[%s3704_s3 + $0x144] ss:$8 sps:$4 sm:$0xff]  }
 0x12a   : > { %v589_v45 = vadd.f32 %v588_v41, %v3334_v7  ;;  %v590_v46 = vpop.f32.mrb[7].mxu0  ;;  %1291 = vmatmul.mubr.bf16.vlgmr.msra.gmra.mrb[32].mxu0 %v830_v29  ;;  %v774_v55 = vmax.f32 %v585_v35, 0.0  ;;  %v698_v15 = vadd.f32 %v697_v11, %v3355_v24  ;;  %v699_v16 = vpop.f32.mrb[5].mxu1  ;;  %v2834_v29 = vld [vmem:[%s3706_s5 + $0x68] sm:$0xff]  }
 0x12b   : > { %v591_v51 = vadd.f32 %v590_v46, %v3338_v8  ;;  %1372 = vmatpush1.bf16.msra.mxu0 %v2776_v33  ;;  %v775_v59 = vmax.f32 %v587_v40, 0.0  ;;  %v700_v19 = vadd.f32 %v699_v16, %v3357_v27  ;;  %v701_v20 = vpop.f32.mrb[6].mxu1  ;;  %v2835_v41 = vld [vmem:[%s3706_s5 + $0x28] sm:$0xff]   ;;  %2470 = vmatprep.subr.bf16.mxu1 %v2834_v29 }
 0x12c   : > { %v778_v56 = vmax.f32 %v589_v45, 0.0  ;;  %1373 = vmatprep.subr.bf16.mxu0 %v2781_v37  ;;  %v776_v25 = vmax.f32 %v698_v15, 0.0  ;;  %v702_v26 = vadd.f32 %v701_v20, %v3355_v24  ;;  %v703_v28 = vpop.f32.mrb[7].mxu1  ;;  %2471 = vmatpush3.bf16.msra.mxu1 %v2835_v41 }
 0x12d   : > { %v779_v60 = vmax.f32 %v591_v51, 0.0  ;;  %v777_v32 = vmax.f32 %v700_v19, 0.0  ;;  %v704_v33 = vadd.f32 %v703_v28, %v3357_v27  ;;  %2472 = vmatprep.subr.bf16.mxu1 %v2836_v44  ;;  %v2797_v44 = vld [vmem:[%s3704_s3 + $0x170] ss:$8 sps:$4 sm:$0xff]  }
 0x12e   : > { %v834_v63 = vpack.c.bf16 %v778_v56, %v774_v55  ;;  %v780_v37 = vmax.f32 %v702_v26, 0.0 }
 0x12f   : > { %v835_v2 = vpack.c.bf16 %v779_v60, %v775_v59  ;;  %1374 = vmatpush1.bf16.msra.mxu0 %v2779_v52  ;;  %v594_v5 = vpop.f32.mrb[8].mxu0  ;;  %v781_v40 = vmax.f32 %v704_v33, 0.0  ;;  %v2793_v52 = vld [vmem:[%s3704_s3 + $0x154] ss:$8 sps:$4 sm:$0xff]  }
 0x130   : > { %v595_v12 = vadd.f32 %v594_v5, %v3334_v7  ;;  %v596_v13 = vpop.f32.mrb[9].mxu0  ;;  %1375 = vmatprep.subr.bf16.mxu0 %v2784_v57  ;;  %v3430_v43 = vpack.c.bf16 %v780_v37, %v776_v25  ;;  %v2837_v59 = vld [vmem:[%s3706_s5 + $0x30] sm:$0xff]  }
 0x131   : > { %v597_v17 = vadd.f32 %v596_v13, %v3338_v8  ;;  %v598_v18 = vpop.f32.mrb[10].mxu0  ;;  %1300 = vmatprep.mubr.bf16.mxu0 %v835_v2  ;;  %v3438_v48 = vpack.c.bf16 %v781_v40, %v777_v32  ;;  %v707_v49 = vpop.f32.mrb[8].mxu1  ;;  %v2791_v5 = vld [vmem:[%s3704_s3 + $0x150] ss:$8 sps:$4 sm:$0xff]   ;;  %2473 = vmatpush3.bf16.msra.mxu1 %v2837_v59  ;;  %v2800_v59 = vld [vmem:[%s3704_s3 + $0x180] ss:$8 sps:$4 sm:$0xff]  }
 0x132   : > { %v599_v22 = vadd.f32 %v598_v18, %v3334_v7  ;;  %v600_v23 = vpop.f32.mrb[11].mxu0  ;;  %1301 = vmatmul.mubr.bf16.gmra.mrb[36].mxu0 %v834_v63  ;;  %v782_v34 = vmax.f32 %v595_v12, 0.0  ;;  %v708_v53 = vadd.f32 %v707_v49, %v3355_v24  ;;  %v709_v54 = vpop.f32.mrb[9].mxu1 }
 0x133   : > { %v601_v30 = vadd.f32 %v600_v23, %v3338_v8  ;;  %1376 = vmatpush1.bf16.msra.mxu0 %v2782_v9  ;;  %v783_v38 = vmax.f32 %v597_v17, 0.0  ;;  %v710_v57 = vadd.f32 %v709_v54, %v3357_v27  ;;  %v711_v58 = vpop.f32.mrb[10].mxu1  ;;  %v2794_v23 = vld [vmem:[%s3704_s3 + $0x160] ss:$8 sps:$4 sm:$0xff]  }
 0x134   : > { %v786_v35 = vmax.f32 %v599_v22, 0.0  ;;  %1377 = vmatprep.subr.bf16.mxu0 %v2787_v14  ;;  %v784_v62 = vmax.f32 %v708_v53, 0.0  ;;  %v712_v63 = vadd.f32 %v711_v58, %v3355_v24  ;;  %v713_v1 = vpop.f32.mrb[11].mxu1  ;;  %v2796_v14 = vld [vmem:[%s3704_s3 + $0x164] ss:$8 sps:$4 sm:$0xff]  }
 0x135   : > { %v787_v39 = vmax.f32 %v601_v30, 0.0  ;;  %v785_v9 = vmax.f32 %v710_v57, 0.0  ;;  %v714_v11 = vadd.f32 %v713_v1, %v3357_v27  ;;  %v2799_v30 = vld [vmem:[%s3704_s3 + $0x174] ss:$8 sps:$4 sm:$0xff]  }
 0x136   : > { %v838_v42 = vpack.c.bf16 %v786_v35, %v782_v34  ;;  %v788_v15 = vmax.f32 %v712_v63, 0.0  ;;  %v2805_v1 = vld [vmem:[%s3704_s3 + $0x194] ss:$8 sps:$4 sm:$0xff]  }
 0x137   : > { %v839_v45 = vpack.c.bf16 %v787_v39, %v783_v38  ;;  %1378 = vmatpush1.bf16.msra.mxu0 %v2785_v31  ;;  %v604_v46 = vpop.f32.mrb[12].mxu0  ;;  %v789_v18 = vmax.f32 %v714_v11, 0.0 }
 0x138   : > { %v605_v50 = vadd.f32 %v604_v46, %v3334_v7  ;;  %v606_v51 = vpop.f32.mrb[13].mxu0  ;;  %1379 = vmatprep.subr.bf16.mxu0 %v2790_v36  ;;  %v3460_v20 = vpack.c.bf16 %v788_v15, %v784_v62 }
 0x139   : > { %v607_v55 = vadd.f32 %v606_v51, %v3338_v8  ;;  %v608_v56 = vpop.f32.mrb[14].mxu0  ;;  %1310 = vmatprep.mubr.bf16.mxu0 %v839_v45  ;;  %v3465_v25 = vpack.c.bf16 %v789_v18, %v785_v9  ;;  %v717_v26 = vpop.f32.mrb[12].mxu1 }
 0x13a   : > { %v609_v60 = vadd.f32 %v608_v56, %v3334_v7  ;;  %v610_v61 = vpop.f32.mrb[15].mxu0  ;;  %1311 = vmatmul.mubr.bf16.gmra.mrb[40].mxu0 %v838_v42  ;;  %v790_v12 = vmax.f32 %v605_v50, 0.0  ;;  %v718_v31 = vadd.f32 %v717_v26, %v3355_v24  ;;  %v719_v32 = vpop.f32.mrb[13].mxu1  ;;  %v2802_v50 = vld [vmem:[%s3704_s3 + $0x184] ss:$8 sps:$4 sm:$0xff]  }
 0x13b   : > { %v611_v2 = vadd.f32 %v610_v61, %v3338_v8  ;;  %1380 = vmatpush1.bf16.msra.mxu0 %v2788_v47  ;;  %v791_v16 = vmax.f32 %v607_v55, 0.0  ;;  %v720_v35 = vadd.f32 %v719_v32, %v3357_v27  ;;  %v721_v36 = vpop.f32.mrb[14].mxu1 }
 0x13c   : > { %v794_v13 = vmax.f32 %v609_v60, 0.0  ;;  %1381 = vmatprep.subr.bf16.mxu0 %v2793_v52  ;;  %v792_v39 = vmax.f32 %v718_v31, 0.0  ;;  %v722_v40 = vadd.f32 %v721_v36, %v3355_v24  ;;  %v723_v41 = vpop.f32.mrb[15].mxu1 }
 0x13d   : > { %v795_v17 = vmax.f32 %v611_v2, 0.0  ;;  %v793_v45 = vmax.f32 %v720_v35, 0.0  ;;  %v724_v46 = vadd.f32 %v723_v41, %v3357_v27 }
 0x13e   : > { %v842_v19 = vpack.c.bf16 %v794_v13, %v790_v12  ;;  %v796_v51 = vmax.f32 %v722_v40, 0.0 }
 0x13f   : > { %v843_v21 = vpack.c.bf16 %v795_v17, %v791_v16  ;;  %1382 = vmatpush1.bf16.msra.mxu0 %v2791_v5  ;;  %v614_v22 = vpop.f32.mrb[16].mxu0  ;;  %v797_v54 = vmax.f32 %v724_v46, 0.0 }
 0x140   : > { %v615_v28 = vadd.f32 %v614_v22, %v3334_v7  ;;  %v616_v29 = vpop.f32.mrb[17].mxu0  ;;  %1383 = vmatprep.subr.bf16.mxu0 %v2796_v14  ;;  %v3484_v56 = vpack.c.bf16 %v796_v51, %v792_v39 }
 0x141   : > { %v617_v33 = vadd.f32 %v616_v29, %v3338_v8  ;;  %v618_v34 = vpop.f32.mrb[18].mxu0  ;;  %1320 = vmatprep.mubr.bf16.mxu0 %v843_v21  ;;  %v3489_v60 = vpack.c.bf16 %v797_v54, %v793_v45  ;;  %v727_v61 = vpop.f32.mrb[16].mxu1  ;;  %v2803_v21 = vld [vmem:[%s3704_s3 + $0x190] ss:$8 sps:$4 sm:$0xff]   ;;  %v2808_v29 = vld [vmem:[%s3704_s3 + $0x1a4] ss:$8 sps:$4 sm:$0xff]  }
 0x142   : > { %v619_v37 = vadd.f32 %v618_v34, %v3334_v7  ;;  %v620_v38 = vpop.f32.mrb[19].mxu0  ;;  %1321 = vmatmul.mubr.bf16.gmra.mrb[44].mxu0 %v842_v19  ;;  %v798_v47 = vmax.f32 %v615_v28, 0.0  ;;  %v728_v2 = vadd.f32 %v727_v61, %v3355_v24  ;;  %v729_v5 = vpop.f32.mrb[17].mxu1 }
 0x143   : > { %v621_v42 = vadd.f32 %v620_v38, %v3338_v8  ;;  %1384 = vmatpush1.bf16.msra.mxu0 %v2794_v23  ;;  %v799_v52 = vmax.f32 %v617_v33, 0.0  ;;  %v730_v12 = vadd.f32 %v729_v5, %v3357_v27  ;;  %v731_v13 = vpop.f32.mrb[18].mxu1  ;;  %v2806_v38 = vld [vmem:[%s3704_s3 + $0x1a0] ss:$8 sps:$4 sm:$0xff]  }
 0x144   : > { %v802_v49 = vmax.f32 %v619_v37, 0.0  ;;  %1385 = vmatprep.subr.bf16.mxu0 %v2799_v30  ;;  %v800_v16 = vmax.f32 %v728_v2, 0.0  ;;  %v732_v17 = vadd.f32 %v731_v13, %v3355_v24  ;;  %v733_v18 = vpop.f32.mrb[19].mxu1  ;;  %v2814_v2 = vld [vmem:[%s3704_s3 + $0x1c4] ss:$8 sps:$4 sm:$0xff]  }
 0x145   : > { %v803_v53 = vmax.f32 %v621_v42, 0.0  ;;  %v801_v22 = vmax.f32 %v730_v12, 0.0  ;;  %v734_v23 = vadd.f32 %v733_v18, %v3357_v27 }
 0x146   : > { %v846_v55 = vpack.c.bf16 %v802_v49, %v798_v47  ;;  %v804_v30 = vmax.f32 %v732_v17, 0.0  ;;  %v2812_v17 = vld [vmem:[%s3704_s3 + $0x1c0] ss:$8 sps:$4 sm:$0xff]  }
 0x147   : > { %v847_v57 = vpack.c.bf16 %v803_v53, %v799_v52  ;;  %1386 = vmatpush1.bf16.msra.mxu0 %v2797_v44  ;;  %v624_v58 = vpop.f32.mrb[20].mxu0  ;;  %v805_v33 = vmax.f32 %v734_v23, 0.0  ;;  %v2811_v44 = vld [vmem:[%s3704_s3 + $0x1b4] ss:$8 sps:$4 sm:$0xff]  }
 0x148   : > { %v625_v62 = vadd.f32 %v624_v58, %v3334_v7  ;;  %v626_v63 = vpop.f32.mrb[21].mxu0  ;;  %1387 = vmatprep.subr.bf16.mxu0 %v2802_v50  ;;  %v3508_v35 = vpack.c.bf16 %v804_v30, %v800_v16  ;;  %v2817_v23 = vld [vmem:[%s3704_s3 + $0x1d4] ss:$8 sps:$4 sm:$0xff]  }
 0x149   : > { %v627_v9 = vadd.f32 %v626_v63, %v3338_v8  ;;  %v628_v11 = vpop.f32.mrb[22].mxu0  ;;  %1330 = vmatprep.mubr.bf16.mxu0 %v847_v57  ;;  %v3513_v39 = vpack.c.bf16 %v805_v33, %v801_v22  ;;  %v737_v40 = vpop.f32.mrb[20].mxu1 }
 0x14a   : > { %v629_v14 = vadd.f32 %v628_v11, %v3334_v7  ;;  %v630_v15 = vpop.f32.mrb[23].mxu0  ;;  %1331 = vmatmul.mubr.bf16.gmra.mrb[48].mxu0 %v846_v55  ;;  %v806_v26 = vmax.f32 %v625_v62, 0.0  ;;  %v738_v45 = vadd.f32 %v737_v40, %v3355_v24  ;;  %v739_v46 = vpop.f32.mrb[21].mxu1 }
 0x14b   : > { %v631_v19 = vadd.f32 %v630_v15, %v3338_v8  ;;  %1388 = vmatpush1.bf16.msra.mxu0 %v2800_v59  ;;  %v807_v31 = vmax.f32 %v627_v9, 0.0  ;;  %v740_v50 = vadd.f32 %v739_v46, %v3357_v27  ;;  %v741_v51 = vpop.f32.mrb[22].mxu1  ;;  %v2809_v59 = vld [vmem:[%s3704_s3 + $0x1b0] ss:$8 sps:$4 sm:$0xff]  }
 0x14c   : > { %v810_v28 = vmax.f32 %v629_v14, 0.0  ;;  %1389 = vmatprep.subr.bf16.mxu0 %v2805_v1  ;;  %v808_v54 = vmax.f32 %v738_v45, 0.0  ;;  %v742_v55 = vadd.f32 %v741_v51, %v3355_v24  ;;  %v743_v57 = vpop.f32.mrb[23].mxu1 }
 0x14d   : > { %v811_v32 = vmax.f32 %v631_v19, 0.0  ;;  %v809_v61 = vmax.f32 %v740_v50, 0.0  ;;  %v744_v62 = vadd.f32 %v743_v57, %v3357_v27 }
 0x14e   : > { %v850_v34 = vpack.c.bf16 %v810_v28, %v806_v26  ;;  %v812_v5 = vmax.f32 %v742_v55, 0.0 }
 0x14f   : > { %v851_v36 = vpack.c.bf16 %v811_v32, %v807_v31  ;;  %1390 = vmatpush1.bf16.msra.mxu0 %v2803_v21  ;;  %v634_v37 = vpop.f32.mrb[24].mxu0  ;;  %v813_v12 = vmax.f32 %v744_v62, 0.0 }
 0x150   : > { %v635_v41 = vadd.f32 %v634_v37, %v3334_v7  ;;  %v636_v42 = vpop.f32.mrb[25].mxu0  ;;  %1391 = vmatprep.subr.bf16.mxu0 %v2808_v29  ;;  %v3532_v14 = vpack.c.bf16 %v812_v5, %v808_v54  ;;  %v2818_v54 = vld [vmem:[%s3704_s3 + $0x1e0] ss:$8 sps:$4 sm:$0xff]  }
 0x151   : > { %v637_v47 = vadd.f32 %v636_v42, %v3338_v8  ;;  %v638_v49 = vpop.f32.mrb[26].mxu0  ;;  %1340 = vmatprep.mubr.bf16.mxu0 %v851_v36  ;;  %v3537_v18 = vpack.c.bf16 %v813_v12, %v809_v61  ;;  %v747_v19 = vpop.f32.mrb[24].mxu1 }
 0x152   : > { %v639_v52 = vadd.f32 %v638_v49, %v3334_v7  ;;  %v640_v53 = vpop.f32.mrb[27].mxu0  ;;  %1341 = vmatmul.mubr.bf16.gmra.mrb[52].mxu0 %v850_v34  ;;  %v814_v63 = vmax.f32 %v635_v41, 0.0  ;;  %v748_v26 = vadd.f32 %v747_v19, %v3355_v24  ;;  %v749_v28 = vpop.f32.mrb[25].mxu1  ;;  %v2815_v41 = vld [vmem:[%s3704_s3 + $0x1d0] ss:$8 sps:$4 sm:$0xff]  }
 0x153   : > { %v641_v58 = vadd.f32 %v640_v53, %v3338_v8  ;;  %1392 = vmatpush1.bf16.msra.mxu0 %v2806_v38  ;;  %v815_v9 = vmax.f32 %v637_v47, 0.0  ;;  %v750_v31 = vadd.f32 %v749_v28, %v3357_v27  ;;  %v751_v32 = vpop.f32.mrb[26].mxu1 }
 0x154   : > { %v818_v1 = vmax.f32 %v639_v52, 0.0  ;;  %1393 = vmatprep.subr.bf16.mxu0 %v2811_v44  ;;  %v816_v36 = vmax.f32 %v748_v26, 0.0  ;;  %v752_v37 = vadd.f32 %v751_v32, %v3355_v24  ;;  %v753_v38 = vpop.f32.mrb[27].mxu1 }
 0x155   : > { %v819_v11 = vmax.f32 %v641_v58, 0.0  ;;  %v817_v42 = vmax.f32 %v750_v31, 0.0  ;;  %v754_v44 = vadd.f32 %v753_v38, %v3357_v27  ;;  %v2823_v58 = vld [vmem:[%s3704_s3 + $0x1f4] ss:$8 sps:$4 sm:$0xff]  }
 0x156   : > { %v854_v13 = vpack.c.bf16 %v818_v1, %v814_v63  ;;  %v820_v47 = vmax.f32 %v752_v37, 0.0  ;;  %v2842_v38 = vld [vmem:[#allocation2 + $0x10] sm:$0xff]  }
 0x157   : > { %v855_v15 = vpack.c.bf16 %v819_v11, %v815_v9  ;;  %1394 = vmatpush1.bf16.msra.mxu0 %v2809_v59  ;;  %v644_v16 = vpop.f32.mrb[28].mxu0  ;;  %v821_v51 = vmax.f32 %v754_v44, 0.0  ;;  %v2821_v9 = vld [vmem:[%s3704_s3 + $0x1f0] ss:$8 sps:$4 sm:$0xff]  }
 0x158   : > { %v645_v21 = vadd.f32 %v644_v16, %v3334_v7  ;;  %v646_v22 = vpop.f32.mrb[29].mxu0  ;;  %1395 = vmatprep.subr.bf16.mxu0 %v2814_v2  ;;  %v856_v52 = vpack.c.bf16 %v820_v47, %v816_v36 }
 0x159   : > { %v647_v29 = vadd.f32 %v646_v22, %v3338_v8  ;;  %v648_v30 = vpop.f32.mrb[30].mxu0  ;;  %1350 = vmatprep.mubr.bf16.mxu0 %v855_v15  ;;  %v857_v55 = vpack.c.bf16 %v821_v51, %v817_v42  ;;  %v757_v57 = vpop.f32.mrb[28].mxu1 }
 0x15a   : > { %v649_v33 = vadd.f32 %v648_v30, %v3334_v7  ;;  %v650_v34 = vpop.f32.mrb[31].mxu0  ;;  %1351 = vmatmul.mubr.bf16.gmra.mrb[56].mxu0 %v854_v13  ;;  %v822_v45 = vmax.f32 %v645_v21, 0.0  ;;  %v2820_v7 = vld [vmem:[%s3704_s3 + $0x1e4] ss:$8 sps:$4 sm:$0xff]   ;;  %v758_v59 = vadd.f32 %v757_v57, %v3355_v24  ;;  %v759_v61 = vpop.f32.mrb[29].mxu1 }
 0x15b   : > { %v651_v40 = vadd.f32 %v650_v34, %v3338_v8  ;;  %1396 = vmatpush1.bf16.msra.mxu0 %v2812_v17  ;;  %v823_v49 = vmax.f32 %v647_v29, 0.0  ;;  %v760_v62 = vadd.f32 %v759_v61, %v3357_v27  ;;  %v761_v63 = vpop.f32.mrb[30].mxu1  ;;  %v2841_v29 = vld [vmem:[#allocation2 + $0x8] sm:$0xff]  }
 0x15c   : > { %v826_v46 = vmax.f32 %v649_v33, 0.0  ;;  %1397 = vmatprep.subr.bf16.mxu0 %v2817_v23  ;;  %v824_v1 = vmax.f32 %v758_v59, 0.0  ;;  %v762_v2 = vadd.f32 %v761_v63, %v3355_v24  ;;  %v763_v5 = vpop.f32.mrb[31].mxu1  ;;  %v2838_v24 = vld [vmem:[%s3706_s5 + $0x78] sm:$0xff]  }
 0x15d   : > { %v827_v50 = vmax.f32 %v651_v40, 0.0  ;;  %v825_v11 = vmax.f32 %v760_v62, 0.0  ;;  %v764_v12 = vadd.f32 %v763_v5, %v3357_v27  ;;  %v2839_v27 = vld [vmem:[%s3706_s5 + $0x38] sm:$0xff]   ;;  %2474 = vmatprep.subr.bf16.mxu1 %v2838_v24 }
 0x15e   : > { %v858_v8 = vpack.c.bf16 %v826_v46, %v822_v45  ;;  %v828_v13 = vmax.f32 %v762_v2, 0.0  ;;  %2475 = vmatpush3.bf16.msra.mxu1 %v2839_v27 }
 0x15f   : > { %v859_v53 = vpack.c.bf16 %v827_v50, %v823_v49  ;;  %1398 = vmatpush1.bf16.msra.mxu0 %v2815_v41  ;;  %v829_v15 = vmax.f32 %v764_v12, 0.0 }
 0x160   : > { %1399 = vmatprep.subr.bf16.mxu0 %v2820_v7  ;;  %v860_v16 = vpack.c.bf16 %v828_v13, %v824_v1 }
 0x161   : > { %1360 = vmatprep.mubr.bf16.mxu0 %v859_v53  ;;  %v861_v17 = vpack.c.bf16 %v829_v15, %v825_v11 }
 0x162   : > { %1361 = vmatmul.mubr.bf16.gmra.mrb[60].mxu0 %v858_v8 }
 0x163   : > { %1400 = vmatpush1.bf16.msra.mxu0 %v2818_v54  ;;  %1403 = vmatprep.mubr.bf16.mxu0 %v3402_v10  ;;  %v926_v10 = vld [vmem:[%s3705_s4] sm:$0x3] }
 0x164   : > { %1401 = vmatprep.subr.bf16.mxu0 %v2823_v58 }
 0x167   : > { %1402 = vmatpush1.bf16.msra.mxu0 %v2821_v9 }
 0x16a   : > { %1404 = vmatmul.mubr.bf16.vlgmr.msra.gmra.mrb[32].mxu0 %v3394_v0  ;;  %v2840_v0 = vld [vmem:[#allocation2] sm:$0xff]  }
 0x16b   : > { %1413 = vmatprep.mubr.bf16.mxu0 %v3438_v48  ;;  %2556 = vmatprep.subr.bf16.mxu1 %v2840_v0  ;;  %v3596_v48 = vrot.slane %v926_v10, %v461_v6 }
 0x172   : > { %1414 = vmatmul.mubr.bf16.gmra.mrb[36].mxu0 %v3430_v43  ;;  %v3592_v43 = vrot.slane %v926_v10, %v457_v4 }
 0x173   : > { %1423 = vmatprep.mubr.bf16.mxu0 %v3465_v25 }
 0x17a   : > { %1424 = vmatmul.mubr.bf16.gmra.mrb[40].mxu0 %v3460_v20 }
 0x17b   : > { %1433 = vmatprep.mubr.bf16.mxu0 %v3489_v60 }
 0x182   : > { %1434 = vmatmul.mubr.bf16.gmra.mrb[44].mxu0 %v3484_v56 }
 0x183   : > { %1443 = vmatprep.mubr.bf16.mxu0 %v3513_v39 }
 0x18a   : > { %1444 = vmatmul.mubr.bf16.gmra.mrb[48].mxu0 %v3508_v35 }
 0x18b   : > { %1453 = vmatprep.mubr.bf16.mxu0 %v3537_v18 }
 0x192   : > { %1454 = vmatmul.mubr.bf16.gmra.mrb[52].mxu0 %v3532_v14 }
 0x193   : > { %1463 = vmatprep.mubr.bf16.mxu0 %v857_v55 }
 0x19a   : > { %1464 = vmatmul.mubr.bf16.gmra.mrb[56].mxu0 %v856_v52 }
 0x19b   : > { %1473 = vmatprep.mubr.bf16.mxu0 %v861_v17 }
 0x1a2   : > { %1474 = vmatmul.mubr.bf16.gmra.mrb[60].mxu0 %v860_v16 }
 0x23d   : > { %v1405_v20 = vpop.f32.mrb[32].mxu0 }
 0x23e   : > { %v2620_v25 = vadd.f32 %v1405_v20, %v3592_v43  ;;  %v1407_v56 = vpop.f32.mrb[33].mxu0 }
 0x23f   : > { %v2621_v60 = vadd.f32 %v1407_v56, %v3596_v48  ;;  %v1409_v35 = vpop.f32.mrb[34].mxu0 }
 0x240   : > { %v2622_v39 = vadd.f32 %v1409_v35, %v3592_v43  ;;  %v1411_v14 = vpop.f32.mrb[35].mxu0  ;;  %v1484_v19 = vmax.f32 %v2620_v25, 0.0 }
 0x241   : > { %v2623_v18 = vadd.f32 %v1411_v14, %v3596_v48  ;;  %v1485_v4 = vmax.f32 %v2621_v60, 0.0 }
 0x242   : > { %v1486_v21 = vmax.f32 %v2622_v39, 0.0 }
 0x243   : > { %v1487_v22 = vmax.f32 %v2623_v18, 0.0 }
 0x244   : > { %v1516_v23 = vpack.c.bf16 %v1486_v21, %v1484_v19 }
 0x245   : > { %v1517_v3 = vpack.c.bf16 %v1487_v22, %v1485_v4  ;;  %v1415_v6 = vpop.f32.mrb[36].mxu0 }
 0x246   : > { %v2624_v26 = vadd.f32 %v1415_v6, %v3592_v43  ;;  %v1417_v28 = vpop.f32.mrb[37].mxu0 }
 0x247   : > { %v2625_v30 = vadd.f32 %v1417_v28, %v3596_v48  ;;  %v1419_v31 = vpop.f32.mrb[38].mxu0  ;;  %1699 = vmatprep.mubr.bf16.mxu1 %v1517_v3 }
 0x248   : > { %v2626_v32 = vadd.f32 %v1419_v31, %v3592_v43  ;;  %v1421_v33 = vpop.f32.mrb[39].mxu0  ;;  %1700 = vmatmul.mubr.bf16.vlgmr.msra.gmra.mrb[32].mxu1 %v1516_v23  ;;  %v1488_v36 = vmax.f32 %v2624_v26, 0.0 }
 0x249   : > { %v2627_v34 = vadd.f32 %v1421_v33, %v3596_v48  ;;  %2557 = vmatpush3.bf16.msra.mxu1 %v2840_v0  ;;  %v1489_v40 = vmax.f32 %v2625_v30, 0.0 }
 0x24a   : > { %v1490_v37 = vmax.f32 %v2626_v32, 0.0  ;;  %2558 = vmatprep.subr.bf16.mxu1 %v2841_v29 }
 0x24b   : > { %v1491_v41 = vmax.f32 %v2627_v34, 0.0 }
 0x24c   : > { %v1518_v42 = vpack.c.bf16 %v1490_v37, %v1488_v36 }
 0x24d   : > { %v1519_v44 = vpack.c.bf16 %v1491_v41, %v1489_v40  ;;  %v1425_v45 = vpop.f32.mrb[40].mxu0  ;;  %2559 = vmatpush3.bf16.msra.mxu1 %v2841_v29 }
 0x24e   : > { %v2628_v46 = vadd.f32 %v1425_v45, %v3592_v43  ;;  %v1427_v7 = vpop.f32.mrb[41].mxu0  ;;  %2560 = vmatprep.subr.bf16.mxu1 %v2842_v38 }
 0x24f   : > { %v2629_v47 = vadd.f32 %v1427_v7, %v3596_v48  ;;  %v1429_v49 = vpop.f32.mrb[42].mxu0  ;;  %1707 = vmatprep.mubr.bf16.mxu1 %v1519_v44 }
 0x250   : > { %v2630_v50 = vadd.f32 %v1429_v49, %v3592_v43  ;;  %v1431_v51 = vpop.f32.mrb[43].mxu0  ;;  %1708 = vmatmul.mubr.bf16.gmra.mrb[36].mxu1 %v1518_v42  ;;  %v1492_v52 = vmax.f32 %v2628_v46, 0.0 }
 0x251   : > { %v2631_v8 = vadd.f32 %v1431_v51, %v3596_v48  ;;  %2561 = vmatpush3.bf16.msra.mxu1 %v2842_v38  ;;  %v1493_v54 = vmax.f32 %v2629_v47, 0.0 }
 0x252   : > { %v1494_v53 = vmax.f32 %v2630_v50, 0.0 }
 0x253   : > { %v1495_v55 = vmax.f32 %v2631_v8, 0.0 }
 0x254   : > { %v1520_v57 = vpack.c.bf16 %v1494_v53, %v1492_v52 }
 0x255   : > { %v1521_v58 = vpack.c.bf16 %v1495_v55, %v1493_v54  ;;  %v1435_v59 = vpop.f32.mrb[44].mxu0 }
 0x256   : > { %v2632_v61 = vadd.f32 %v1435_v59, %v3592_v43  ;;  %v1437_v62 = vpop.f32.mrb[45].mxu0 }
 0x257   : > { %v2633_v63 = vadd.f32 %v1437_v62, %v3596_v48  ;;  %v1439_v1 = vpop.f32.mrb[46].mxu0  ;;  %1715 = vmatprep.mubr.bf16.mxu1 %v1521_v58 }
 0x258   : > { %v2634_v2 = vadd.f32 %v1439_v1, %v3592_v43  ;;  %v1441_v5 = vpop.f32.mrb[47].mxu0  ;;  %1716 = vmatmul.mubr.bf16.gmra.mrb[40].mxu1 %v1520_v57  ;;  %v1496_v11 = vmax.f32 %v2632_v61, 0.0 }
 0x259   : > { %v2635_v9 = vadd.f32 %v1441_v5, %v3596_v48  ;;  %v1497_v13 = vmax.f32 %v2633_v63, 0.0 }
 0x25a   : > { %v1498_v12 = vmax.f32 %v2634_v2, 0.0 }
 0x25b   : > { %v1499_v15 = vmax.f32 %v2635_v9, 0.0 }
 0x25c   : > { %v1522_v16 = vpack.c.bf16 %v1498_v12, %v1496_v11  ;;  %v2843_v11 = vld [vmem:[#allocation2 + $0x18] sm:$0xff]   ;;  %v2844_v12 = vld [vmem:[#allocation2 + $0x20] sm:$0xff]  }
 0x25d   : > { %v1523_v17 = vpack.c.bf16 %v1499_v15, %v1497_v13  ;;  %v1445_v24 = vpop.f32.mrb[48].mxu0  ;;  %2562 = vmatprep.subr.bf16.mxu1 %v2843_v11  ;;  %v2845_v13 = vld [vmem:[#allocation2 + $0x28] sm:$0xff]   ;;  %v2848_v15 = vld [vmem:[#allocation4] sm:$0xff]  }
 0x25e   : > { %v2636_v27 = vadd.f32 %v1445_v24, %v3592_v43  ;;  %v1447_v0 = vpop.f32.mrb[49].mxu0  ;;  %2563 = vmatpush3.bf16.msra.mxu1 %v2843_v11 }
 0x25f   : > { %v2637_v10 = vadd.f32 %v1447_v0, %v3596_v48  ;;  %v1449_v20 = vpop.f32.mrb[50].mxu0  ;;  %1723 = vmatprep.mubr.bf16.mxu1 %v1523_v17  ;;  %2564 = vmatprep.subr.bf16.mxu1 %v2844_v12  ;;  %v3633_v17 = vld [vmem:[%s3707_s6] ss:$0 sm:$0xff] }
 0x260   : > { %v2638_v25 = vadd.f32 %v1449_v20, %v3592_v43  ;;  %v1451_v56 = vpop.f32.mrb[51].mxu0  ;;  %1724 = vmatmul.mubr.bf16.gmra.mrb[44].mxu1 %v1522_v16  ;;  %v1500_v35 = vmax.f32 %v2636_v27, 0.0 }
 0x261   : > { %v2639_v60 = vadd.f32 %v1451_v56, %v3596_v48  ;;  %v1501_v14 = vmax.f32 %v2637_v10, 0.0 }
 0x262   : > { %v1502_v39 = vmax.f32 %v2638_v25, 0.0  ;;  %2565 = vmatpush3.bf16.msra.mxu1 %v2844_v12 }
 0x263   : > { %v1503_v18 = vmax.f32 %v2639_v60, 0.0  ;;  %2566 = vmatprep.subr.bf16.mxu1 %v2845_v13 }
 0x264   : > { %v1524_v19 = vpack.c.bf16 %v1502_v39, %v1500_v35 }
 0x265   : > { %v1525_v21 = vpack.c.bf16 %v1503_v18, %v1501_v14  ;;  %v1455_v4 = vpop.f32.mrb[52].mxu0 }
 0x266   : > { %v2640_v22 = vadd.f32 %v1455_v4, %v3592_v43  ;;  %v1457_v23 = vpop.f32.mrb[53].mxu0  ;;  %2567 = vmatpush3.bf16.msra.mxu1 %v2845_v13 }
 0x267   : > { %v2641_v3 = vadd.f32 %v1457_v23, %v3596_v48  ;;  %v1459_v6 = vpop.f32.mrb[54].mxu0  ;;  %1731 = vmatprep.mubr.bf16.mxu1 %v1525_v21 }
 0x268   : > { %v2642_v26 = vadd.f32 %v1459_v6, %v3592_v43  ;;  %v1461_v28 = vpop.f32.mrb[55].mxu0  ;;  %1732 = vmatmul.mubr.bf16.gmra.mrb[48].mxu1 %v1524_v19  ;;  %v1504_v30 = vmax.f32 %v2640_v22, 0.0 }
 0x269   : > { %v2643_v29 = vadd.f32 %v1461_v28, %v3596_v48  ;;  %v1505_v32 = vmax.f32 %v2641_v3, 0.0 }
 0x26a   : > { %v1506_v31 = vmax.f32 %v2642_v26, 0.0 }
 0x26b   : > { %v1507_v33 = vmax.f32 %v2643_v29, 0.0 }
 0x26c   : > { %v1526_v34 = vpack.c.bf16 %v1506_v31, %v1504_v30 }
 0x26d   : > { %v1527_v36 = vpack.c.bf16 %v1507_v33, %v1505_v32  ;;  %v1465_v37 = vpop.f32.mrb[56].mxu0  ;;  %v2849_v33 = vld [vmem:[#allocation4 + $0x8] sm:$0xff]  }
 0x26e   : > { %v2644_v38 = vadd.f32 %v1465_v37, %v3592_v43  ;;  %v1467_v40 = vpop.f32.mrb[57].mxu0 }
 0x26f   : > { %v2645_v41 = vadd.f32 %v1467_v40, %v3596_v48  ;;  %v1469_v42 = vpop.f32.mrb[58].mxu0  ;;  %1739 = vmatprep.mubr.bf16.mxu1 %v1527_v36  ;;  %v2850_v40 = vld [vmem:[#allocation4 + $0x10] sm:$0xff]  }
 0x270   : > { %v2646_v44 = vadd.f32 %v1469_v42, %v3592_v43  ;;  %v1471_v45 = vpop.f32.mrb[59].mxu0  ;;  %1740 = vmatmul.mubr.bf16.gmra.mrb[52].mxu1 %v1526_v34  ;;  %v1508_v7 = vmax.f32 %v2644_v38, 0.0 }
 0x271   : > { %v2647_v46 = vadd.f32 %v1471_v45, %v3596_v48  ;;  %v1509_v49 = vmax.f32 %v2645_v41, 0.0 }
 0x272   : > { %v1510_v47 = vmax.f32 %v2646_v44, 0.0 }
 0x273   : > { %v1511_v50 = vmax.f32 %v2647_v46, 0.0 }
 0x274   : > { %v1528_v51 = vpack.c.bf16 %v1510_v47, %v1508_v7 }
 0x275   : > { %v1529_v8 = vpack.c.bf16 %v1511_v50, %v1509_v49  ;;  %v1475_v52 = vpop.f32.mrb[60].mxu0  ;;  %v2851_v49 = vld [vmem:[#allocation4 + $0x18] sm:$0xff]  }
 0x276   : > { %v2648_v53 = vadd.f32 %v1475_v52, %v3592_v43  ;;  %v1477_v54 = vpop.f32.mrb[61].mxu0 }
 0x277   : > { %v2649_v55 = vadd.f32 %v1477_v54, %v3596_v48  ;;  %v1479_v57 = vpop.f32.mrb[62].mxu0  ;;  %1747 = vmatprep.mubr.bf16.mxu1 %v1529_v8 }
 0x278   : > { %v2650_v58 = vadd.f32 %v1479_v57, %v3592_v43  ;;  %v1481_v59 = vpop.f32.mrb[63].mxu0  ;;  %1748 = vmatmul.mubr.bf16.gmra.mrb[56].mxu1 %v1528_v51  ;;  %v1512_v62 = vmax.f32 %v2648_v53, 0.0  ;;  %v2846_v43 = vld [vmem:[#allocation2 + $0x30] sm:$0xff]   ;;  %v2852_v53 = vld [vmem:[#allocation4 + $0x20] sm:$0xff]  }
 0x279   : > { %v2651_v61 = vadd.f32 %v1481_v59, %v3596_v48  ;;  %v1513_v1 = vmax.f32 %v2649_v55, 0.0  ;;  %2568 = vmatprep.subr.bf16.mxu1 %v2846_v43  ;;  %v2847_v48 = vld [vmem:[#allocation2 + $0x38] sm:$0xff]  }
 0x27a   : > { %v1514_v63 = vmax.f32 %v2650_v58, 0.0  ;;  %2569 = vmatpush3.bf16.msra.mxu1 %v2846_v43 }
 0x27b   : > { %v1515_v2 = vmax.f32 %v2651_v61, 0.0  ;;  %2570 = vmatprep.subr.bf16.mxu1 %v2847_v48 }
 0x27c   : > { %v1530_v5 = vpack.c.bf16 %v1514_v63, %v1512_v62  ;;  %v2853_v63 = vld [vmem:[#allocation4 + $0x28] sm:$0xff]  }
 0x27d   : > { %v1531_v9 = vpack.c.bf16 %v1515_v2, %v1513_v1 }
 0x27e   : > { %2571 = vmatpush3.bf16.msra.mxu1 %v2847_v48 }
 0x27f   : > { %1755 = vmatprep.mubr.bf16.mxu1 %v1531_v9  ;;  %2588 = vmatprep.subr.bf16.mxu1 %v2848_v15 }
 0x280   : > { %1756 = vmatmul.mubr.bf16.gmra.mrb[60].mxu1 %v1530_v5 }
 0x31b   : > { %v2476_v16 = vpop.f32.mrb[32].mxu1 }
 0x31c   : > { %v2477_v24 = vpop.f32.mrb[33].mxu1 }
 0x31d   : > { %v2478_v27 = vadd.f32 %v2477_v24, %v2476_v16  ;;  %v2479_v0 = vpop.f32.mrb[34].mxu1 }
 0x31e   : > { %v2480_v10 = vpop.f32.mrb[35].mxu1 }
 0x31f   : > { %v1702_v20 = vadd.f32 %v2478_v27, %v3633_v17  ;;  %v2481_v25 = vadd.f32 %v2480_v10, %v2479_v0 }
 0x321   : > { %v1705_v56 = vadd.f32 %v2481_v25, %v3633_v17  ;;  %v1764_v60 = vmax.f32 %v1702_v20, 0.0 }
 0x323   : > { %v1765_v35 = vmax.f32 %v1705_v56, 0.0  ;;  %v2482_v39 = vpop.f32.mrb[36].mxu1 }
 0x324   : > { %v2483_v14 = vpop.f32.mrb[37].mxu1 }
 0x325   : > { %v2484_v18 = vadd.f32 %v2483_v14, %v2482_v39  ;;  %v2485_v19 = vpop.f32.mrb[38].mxu1  ;;  %v1780_v21 = vpack.c.bf16 %v1765_v35, %v1764_v60 }
 0x326   : > { %v2486_v4 = vpop.f32.mrb[39].mxu1 }
 0x327   : > { %v1710_v22 = vadd.f32 %v2484_v18, %v3633_v17  ;;  %v2487_v23 = vadd.f32 %v2486_v4, %v2485_v19  ;;  %2572 = vmatprep.mubr.bf16.mxu1 %v1780_v21 }
 0x329   : > { %v1713_v3 = vadd.f32 %v2487_v23, %v3633_v17  ;;  %v1766_v6 = vmax.f32 %v1710_v22, 0.0 }
 0x32b   : > { %v1767_v26 = vmax.f32 %v1713_v3, 0.0  ;;  %v2488_v28 = vpop.f32.mrb[40].mxu1 }
 0x32c   : > { %v2489_v29 = vpop.f32.mrb[41].mxu1 }
 0x32d   : > { %v1781_v30 = vpack.c.bf16 %v1767_v26, %v1766_v6  ;;  %v2490_v31 = vadd.f32 %v2489_v29, %v2488_v28  ;;  %v2491_v32 = vpop.f32.mrb[42].mxu1 }
 0x32e   : > { %v2492_v34 = vpop.f32.mrb[43].mxu1 }
 0x32f   : > { %v1718_v36 = vadd.f32 %v2490_v31, %v3633_v17  ;;  %v2493_v37 = vadd.f32 %v2492_v34, %v2491_v32  ;;  %2573 = vmatmul.mubr.bf16.vlgmr.msra.gmra.mrb[64].mxu1 %v1781_v30 }
 0x330   : > { %2589 = vmatpush3.bf16.msra.mxu1 %v2848_v15 }
 0x331   : > { %v1721_v38 = vadd.f32 %v2493_v37, %v3633_v17  ;;  %2590 = vmatprep.subr.bf16.mxu1 %v2849_v33  ;;  %v1768_v41 = vmax.f32 %v1718_v36, 0.0 }
 0x333   : > { %v1769_v42 = vmax.f32 %v1721_v38, 0.0  ;;  %v2494_v44 = vpop.f32.mrb[44].mxu1  ;;  %v2854_v38 = vld [vmem:[#allocation4 + $0x30] sm:$0xff]  }
 0x334   : > { %v2495_v45 = vpop.f32.mrb[45].mxu1  ;;  %2591 = vmatpush3.bf16.msra.mxu1 %v2849_v33 }
 0x335   : > { %v2496_v46 = vadd.f32 %v2495_v45, %v2494_v44  ;;  %v2497_v7 = vpop.f32.mrb[46].mxu1  ;;  %v1782_v47 = vpack.c.bf16 %v1769_v42, %v1768_v41  ;;  %2592 = vmatprep.subr.bf16.mxu1 %v2850_v40  ;;  %v2440_v41 = vld [vmem:[%s3709_s8] ss:$0 sm:$0xff] }
 0x336   : > { %v2498_v50 = vpop.f32.mrb[47].mxu1 }
 0x337   : > { %v1726_v51 = vadd.f32 %v2496_v46, %v3633_v17  ;;  %v2499_v8 = vadd.f32 %v2498_v50, %v2497_v7  ;;  %2576 = vmatprep.mubr.bf16.mxu1 %v1782_v47 }
 0x338   : > { %2593 = vmatpush3.bf16.msra.mxu1 %v2850_v40  ;;  %v2855_v40 = vld [vmem:[#allocation4 + $0x38] sm:$0xff]  }
 0x339   : > { %v1729_v52 = vadd.f32 %v2499_v8, %v3633_v17  ;;  %2594 = vmatprep.subr.bf16.mxu1 %v2851_v49  ;;  %v1770_v54 = vmax.f32 %v1726_v51, 0.0 }
 0x33b   : > { %v1771_v55 = vmax.f32 %v1729_v52, 0.0  ;;  %v2500_v57 = vpop.f32.mrb[48].mxu1 }
 0x33c   : > { %v2501_v58 = vpop.f32.mrb[49].mxu1  ;;  %2595 = vmatpush3.bf16.msra.mxu1 %v2851_v49 }
 0x33d   : > { %v2502_v59 = vadd.f32 %v2501_v58, %v2500_v57  ;;  %v2503_v61 = vpop.f32.mrb[50].mxu1  ;;  %v1783_v62 = vpack.c.bf16 %v1771_v55, %v1770_v54  ;;  %2596 = vmatprep.subr.bf16.mxu1 %v2852_v53 }
 0x33e   : > { %v2504_v1 = vpop.f32.mrb[51].mxu1 }
 0x33f   : > { %v1734_v2 = vadd.f32 %v2502_v59, %v3633_v17  ;;  %v2505_v5 = vadd.f32 %v2504_v1, %v2503_v61  ;;  %2577 = vmatmul.mubr.bf16.gmra.mrb[68].mxu1 %v1783_v62 }
 0x340   : > { %2597 = vmatpush3.bf16.msra.mxu1 %v2852_v53 }
 0x341   : > { %v1737_v9 = vadd.f32 %v2505_v5, %v3633_v17  ;;  %2598 = vmatprep.subr.bf16.mxu1 %v2853_v63  ;;  %v1772_v11 = vmax.f32 %v1734_v2, 0.0 }
 0x343   : > { %v1773_v12 = vmax.f32 %v1737_v9, 0.0  ;;  %v2506_v13 = vpop.f32.mrb[52].mxu1 }
 0x344   : > { %v2507_v43 = vpop.f32.mrb[53].mxu1  ;;  %2599 = vmatpush3.bf16.msra.mxu1 %v2853_v63 }
 0x345   : > { %v2508_v48 = vadd.f32 %v2507_v43, %v2506_v13  ;;  %v2509_v15 = vpop.f32.mrb[54].mxu1  ;;  %v1784_v16 = vpack.c.bf16 %v1773_v12, %v1772_v11  ;;  %2600 = vmatprep.subr.bf16.mxu1 %v2854_v38 }
 0x346   : > { %v2510_v24 = vpop.f32.mrb[55].mxu1 }
 0x347   : > { %v1742_v27 = vadd.f32 %v2508_v48, %v3633_v17  ;;  %v2511_v0 = vadd.f32 %v2510_v24, %v2509_v15  ;;  %2580 = vmatprep.mubr.bf16.mxu1 %v1784_v16 }
 0x348   : > { %2601 = vmatpush3.bf16.msra.mxu1 %v2854_v38 }
 0x349   : > { %v1745_v10 = vadd.f32 %v2511_v0, %v3633_v17  ;;  %v1774_v20 = vmax.f32 %v1742_v27, 0.0  ;;  %2602 = vmatprep.subr.bf16.mxu1 %v2855_v40 }
 0x34b   : > { %v1775_v25 = vmax.f32 %v1745_v10, 0.0  ;;  %v2512_v56 = vpop.f32.mrb[56].mxu1 }
 0x34c   : > { %v2513_v60 = vpop.f32.mrb[57].mxu1  ;;  %2603 = vmatpush3.bf16.msra.mxu1 %v2855_v40 }
 0x34d   : > { %v2514_v35 = vadd.f32 %v2513_v60, %v2512_v56  ;;  %v2515_v39 = vpop.f32.mrb[58].mxu1  ;;  %v1785_v14 = vpack.c.bf16 %v1775_v25, %v1774_v20 }
 0x34e   : > { %v2516_v18 = vpop.f32.mrb[59].mxu1 }
 0x34f   : > { %v1750_v19 = vadd.f32 %v2514_v35, %v3633_v17  ;;  %v2517_v21 = vadd.f32 %v2516_v18, %v2515_v39  ;;  %2581 = vmatmul.mubr.bf16.gmra.mrb[72].mxu1 %v1785_v14 }
 0x351   : > { %v1753_v4 = vadd.f32 %v2517_v21, %v3633_v17  ;;  %v1776_v22 = vmax.f32 %v1750_v19, 0.0 }
 0x353   : > { %v1777_v23 = vmax.f32 %v1753_v4, 0.0  ;;  %v2518_v3 = vpop.f32.mrb[60].mxu1 }
 0x354   : > { %v2519_v6 = vpop.f32.mrb[61].mxu1 }
 0x355   : > { %v2520_v26 = vadd.f32 %v2519_v6, %v2518_v3  ;;  %v2521_v28 = vpop.f32.mrb[62].mxu1  ;;  %v1786_v29 = vpack.c.bf16 %v1777_v23, %v1776_v22 }
 0x356   : > { %v2522_v30 = vpop.f32.mrb[63].mxu1 }
 0x357   : > { %v1758_v31 = vadd.f32 %v2520_v26, %v3633_v17  ;;  %v2523_v32 = vadd.f32 %v2522_v30, %v2521_v28  ;;  %2584 = vmatprep.mubr.bf16.mxu1 %v1786_v29 }
 0x359   : > { %v1761_v33 = vadd.f32 %v2523_v32, %v3633_v17  ;;  %v1778_v34 = vmax.f32 %v1758_v31, 0.0  ;;  %v3657_v32 = vld [vmem:[%s3711_s10] ss:$0 sm:$0xff] }
 0x35b   : > { %v1779_v36 = vmax.f32 %v1761_v33, 0.0 }
 0x35d   : > { %v1787_v37 = vpack.c.bf16 %v1779_v36, %v1778_v34 }
 0x35f   : > { %2585 = vmatmul.mubr.bf16.gmra.mrb[76].mxu1 %v1787_v37 }
 0x402   : > { %v2574_v42 = vpop.f32.mrb[64].mxu1 }
 0x403   : > { %v1902_v44 = vadd.f32 %v2574_v42, %v2440_v41  ;;  %v1893_v45 = vpop.f32.mrb[65].mxu1 }
 0x404   : > { %v1894_v46 = vadd.f32 %v2440_v41, %v1893_v45  ;;  %v2575_v7 = vpop.f32.mrb[66].mxu1 }
 0x405   : > { %v1905_v17 = vadd.f32 %v2575_v7, %v2440_v41  ;;  %v1896_v47 = vpop.f32.mrb[67].mxu1  ;;  %v1958_v50 = vmax.f32 %v1902_v44, 0.0 }
 0x406   : > { %v1897_v49 = vadd.f32 %v2440_v41, %v1896_v47  ;;  %v1956_v8 = vmax.f32 %v1894_v46, 0.0 }
 0x407   : > { %v1959_v51 = vmax.f32 %v1905_v17, 0.0 }
 0x408   : > { %v1957_v52 = vmax.f32 %v1897_v49, 0.0 }
 0x409   : > { %v1973_v53 = vpack.c.bf16 %v1959_v51, %v1958_v50 }
 0x40a   : > { %v1972_v54 = vpack.c.bf16 %v1957_v52, %v1956_v8 }
 0x40c   : > { %2604 = vmatprep.mubr.bf16.mxu1 %v1972_v54 }
 0x40d   : > { %2605 = vmatmul.mubr.bf16.vlgmr.msra.gmra.mrb[80].mxu1 %v1973_v53 }
 0x412   : > { %v2578_v55 = vpop.f32.mrb[68].mxu1 }
 0x413   : > { %v1918_v57 = vadd.f32 %v2578_v55, %v2440_v41  ;;  %v1909_v58 = vpop.f32.mrb[69].mxu1 }
 0x414   : > { %v1910_v59 = vadd.f32 %v2440_v41, %v1909_v58  ;;  %v2579_v61 = vpop.f32.mrb[70].mxu1 }
 0x415   : > { %v1921_v62 = vadd.f32 %v2579_v61, %v2440_v41  ;;  %v1912_v63 = vpop.f32.mrb[71].mxu1  ;;  %v1962_v2 = vmax.f32 %v1918_v57, 0.0 }
 0x416   : > { %v1913_v1 = vadd.f32 %v2440_v41, %v1912_v63  ;;  %v1960_v9 = vmax.f32 %v1910_v59, 0.0 }
 0x417   : > { %v1963_v5 = vmax.f32 %v1921_v62, 0.0 }
 0x418   : > { %v1961_v11 = vmax.f32 %v1913_v1, 0.0 }
 0x419   : > { %v1975_v12 = vpack.c.bf16 %v1963_v5, %v1962_v2 }
 0x41a   : > { %v1974_v13 = vpack.c.bf16 %v1961_v11, %v1960_v9 }
 0x41c   : > { %2608 = vmatprep.mubr.bf16.mxu1 %v1974_v13 }
 0x41d   : > { %2609 = vmatmul.mubr.bf16.gmra.mrb[84].mxu1 %v1975_v12 }
 0x422   : > { %v2582_v43 = vpop.f32.mrb[72].mxu1 }
 0x423   : > { %v1934_v48 = vadd.f32 %v2582_v43, %v2440_v41  ;;  %v1925_v15 = vpop.f32.mrb[73].mxu1 }
 0x424   : > { %v1926_v16 = vadd.f32 %v2440_v41, %v1925_v15  ;;  %v2583_v24 = vpop.f32.mrb[74].mxu1 }
 0x425   : > { %v1937_v27 = vadd.f32 %v2583_v24, %v2440_v41  ;;  %v1928_v0 = vpop.f32.mrb[75].mxu1  ;;  %v1966_v20 = vmax.f32 %v1934_v48, 0.0 }
 0x426   : > { %v1929_v10 = vadd.f32 %v2440_v41, %v1928_v0  ;;  %v1964_v56 = vmax.f32 %v1926_v16, 0.0 }
 0x427   : > { %v1967_v25 = vmax.f32 %v1937_v27, 0.0 }
 0x428   : > { %v1965_v60 = vmax.f32 %v1929_v10, 0.0 }
 0x429   : > { %v1977_v35 = vpack.c.bf16 %v1967_v25, %v1966_v20 }
 0x42a   : > { %v1976_v39 = vpack.c.bf16 %v1965_v60, %v1964_v56 }
 0x42c   : > { %2612 = vmatprep.mubr.bf16.mxu1 %v1976_v39 }
 0x42d   : > { %2613 = vmatmul.mubr.bf16.gmra.mrb[88].mxu1 %v1977_v35 }
 0x432   : > { %v2586_v14 = vpop.f32.mrb[76].mxu1 }
 0x433   : > { %v1950_v18 = vadd.f32 %v2586_v14, %v2440_v41  ;;  %v1941_v19 = vpop.f32.mrb[77].mxu1 }
 0x434   : > { %v1942_v21 = vadd.f32 %v2440_v41, %v1941_v19  ;;  %v2587_v4 = vpop.f32.mrb[78].mxu1 }
 0x435   : > { %v1953_v22 = vadd.f32 %v2587_v4, %v2440_v41  ;;  %v1944_v23 = vpop.f32.mrb[79].mxu1  ;;  %v1970_v6 = vmax.f32 %v1950_v18, 0.0 }
 0x436   : > { %v1945_v3 = vadd.f32 %v2440_v41, %v1944_v23  ;;  %v1968_v28 = vmax.f32 %v1942_v21, 0.0 }
 0x437   : > { %v1971_v26 = vmax.f32 %v1953_v22, 0.0 }
 0x438   : > { %v1969_v29 = vmax.f32 %v1945_v3, 0.0 }
 0x439   : > { %v1979_v30 = vpack.c.bf16 %v1971_v26, %v1970_v6 }
 0x43a   : > { %v1978_v31 = vpack.c.bf16 %v1969_v29, %v1968_v28 }
 0x43c   : > { %2616 = vmatprep.mubr.bf16.mxu1 %v1978_v31 }
 0x43d   : > { %2617 = vmatmul.mubr.bf16.gmra.mrb[92].mxu1 %v1979_v30 }
 0x4e0   : > { %v2606_v33 = vpop.f32.mrb[80].mxu1 }
 0x4e1   : > { %v2094_v34 = vadd.f32 %v2606_v33, %v3657_v32  ;;  %v2085_v36 = vpop.f32.mrb[81].mxu1 }
 0x4e2   : > { %v2086_v37 = vadd.f32 %v3657_v32, %v2085_v36  ;;  %v2607_v38 = vpop.f32.mrb[82].mxu1 }
 0x4e3   : > { %v2150_v40 = vsub.f32 0.0, %v2094_v34  ;;  %v2097_v41 = vadd.f32 %v2607_v38, %v3657_v32  ;;  %v2088_v42 = vpop.f32.mrb[83].mxu1 }
 0x4e4   : > { %v2148_v44 = vsub.f32 0.0, %v2086_v37  ;;  %v2089_v45 = vadd.f32 %v3657_v32, %v2088_v42 }
 0x4e5   : > { %v2168_v46 = vmul.f32 1.442695, %v2150_v40  ;;  %v2151_v7 = vsub.f32 0.0, %v2097_v41 }
 0x4e6   : > { %v2164_v17 = vmul.f32 1.442695, %v2148_v44  ;;  %v2149_v47 = vsub.f32 0.0, %v2089_v45 }
 0x4e7   : > { %2856 = vpow2.f32 %v2168_v46  ;;  %v2170_v49 = vmul.f32 1.442695, %v2151_v7 }
 0x4e8   : > { %2858 = vpow2.f32 %v2164_v17  ;;  %v2166_v50 = vmul.f32 1.442695, %v2149_v47 }
 0x4e9   : > { %2860 = vpow2.f32 %v2170_v49 }
 0x4ea   : > { %2862 = vpow2.f32 %v2166_v50 }
 0x4f0   : > { %v2610_v51 = vpop.f32.mrb[84].mxu1 }
 0x4f1   : > { %v2857_v8 = vpop.eup %2856  ;;  %v2110_v52 = vadd.f32 %v2610_v51, %v3657_v32  ;;  %v2101_v53 = vpop.f32.mrb[85].mxu1 }
 0x4f2   : > { %v2859_v54 = vpop.eup %2858  ;;  %v2198_v55 = vadd.f32 1.0, %v2857_v8  ;;  %v2102_v57 = vadd.f32 %v3657_v32, %v2101_v53  ;;  %v2611_v58 = vpop.f32.mrb[86].mxu1 }
 0x4f3   : > { %v2861_v59 = vpop.eup %2860  ;;  %v2196_v61 = vadd.f32 1.0, %v2859_v54  ;;  %v2154_v62 = vsub.f32 0.0, %v2110_v52  ;;  %v2113_v63 = vadd.f32 %v2611_v58, %v3657_v32  ;;  %v2104_v1 = vpop.f32.mrb[87].mxu1 }
 0x4f4   : > { %v2863_v2 = vpop.eup %2862  ;;  %2864 = vrcp.f32 %v2198_v55  ;;  %v2199_v5 = vadd.f32 1.0, %v2861_v59  ;;  %v2152_v9 = vsub.f32 0.0, %v2102_v57  ;;  %v2105_v11 = vadd.f32 %v3657_v32, %v2104_v1 }
 0x4f5   : > { %2866 = vrcp.f32 %v2196_v61  ;;  %v2197_v12 = vadd.f32 1.0, %v2863_v2  ;;  %v2176_v13 = vmul.f32 1.442695, %v2154_v62  ;;  %v2155_v43 = vsub.f32 0.0, %v2113_v63 }
 0x4f6   : > { %2868 = vrcp.f32 %v2199_v5  ;;  %v2172_v48 = vmul.f32 1.442695, %v2152_v9  ;;  %v2153_v15 = vsub.f32 0.0, %v2105_v11 }
 0x4f7   : > { %2870 = vrcp.f32 %v2197_v12  ;;  %v2178_v16 = vmul.f32 1.442695, %v2155_v43 }
 0x4f8   : > { %2872 = vpow2.f32 %v2176_v13  ;;  %v2174_v24 = vmul.f32 1.442695, %v2153_v15 }
 0x4f9   : > { %2874 = vpow2.f32 %v2172_v48 }
 0x4fa   : > { %2876 = vpow2.f32 %v2178_v16 }
 0x4fb   : > { %2878 = vpow2.f32 %v2174_v24 }
 0x4fe   : > { %v2865_v27 = vpop.eup %2864 }
 0x4ff   : > { %v2867_v0 = vpop.eup %2866  ;;  %2230 = vst [vmem:[%s3672_s22 + $0x10] sm:$0xff] %v2865_v27 }
 0x500   : > { %v2869_v10 = vpop.eup %2868  ;;  %2228 = vst [vmem:[%s3672_s22] sm:$0xff] %v2867_v0  ;;  %v2614_v20 = vpop.f32.mrb[88].mxu1 }
 0x501   : > { %v2871_v25 = vpop.eup %2870  ;;  %2231 = vst [vmem:[%s3672_s22 + $0x18] sm:$0xff] %v2869_v10  ;;  %v2126_v56 = vadd.f32 %v2614_v20, %v3657_v32  ;;  %v2117_v60 = vpop.f32.mrb[89].mxu1 }
 0x502   : > { %v2873_v35 = vpop.eup %2872  ;;  %2229 = vst [vmem:[%s3672_s22 + $0x8] sm:$0xff] %v2871_v25  ;;  %v2118_v39 = vadd.f32 %v3657_v32, %v2117_v60  ;;  %v2615_v14 = vpop.f32.mrb[90].mxu1 }
 0x503   : > { %v2875_v18 = vpop.eup %2874  ;;  %v2202_v19 = vadd.f32 1.0, %v2873_v35  ;;  %v2158_v21 = vsub.f32 0.0, %v2126_v56  ;;  %v2129_v4 = vadd.f32 %v2615_v14, %v3657_v32  ;;  %v2120_v22 = vpop.f32.mrb[91].mxu1 }
 0x504   : > { %v2877_v23 = vpop.eup %2876  ;;  %v2200_v3 = vadd.f32 1.0, %v2875_v18  ;;  %v2156_v6 = vsub.f32 0.0, %v2118_v39  ;;  %v2121_v26 = vadd.f32 %v3657_v32, %v2120_v22 }
 0x505   : > { %v2879_v28 = vpop.eup %2878  ;;  %2880 = vrcp.f32 %v2202_v19  ;;  %v2203_v29 = vadd.f32 1.0, %v2877_v23  ;;  %v2184_v30 = vmul.f32 1.442695, %v2158_v21  ;;  %v2159_v31 = vsub.f32 0.0, %v2129_v4 }
 0x506   : > { %2882 = vrcp.f32 %v2200_v3  ;;  %v2201_v33 = vadd.f32 1.0, %v2879_v28  ;;  %v2180_v34 = vmul.f32 1.442695, %v2156_v6  ;;  %v2157_v36 = vsub.f32 0.0, %v2121_v26 }
 0x507   : > { %2884 = vrcp.f32 %v2203_v29  ;;  %v2186_v37 = vmul.f32 1.442695, %v2159_v31 }
 0x508   : > { %2886 = vrcp.f32 %v2201_v33  ;;  %v2182_v38 = vmul.f32 1.442695, %v2157_v36 }
 0x509   : > { %2888 = vpow2.f32 %v2184_v30 }
 0x50a   : > { %2890 = vpow2.f32 %v2180_v34 }
 0x50b   : > { %2892 = vpow2.f32 %v2186_v37 }
 0x50c   : > { %2894 = vpow2.f32 %v2182_v38 }
 0x50f   : > { %v2881_v40 = vpop.eup %2880 }
 0x510   : > { %v2883_v41 = vpop.eup %2882  ;;  %2234 = vst [vmem:[%s3672_s22 + $0x30] sm:$0xff] %v2881_v40  ;;  %v2618_v42 = vpop.f32.mrb[92].mxu1 }
 0x511   : > { %v2885_v44 = vpop.eup %2884  ;;  %2232 = vst [vmem:[%s3672_s22 + $0x20] sm:$0xff] %v2883_v41  ;;  %v2142_v45 = vadd.f32 %v2618_v42, %v3657_v32  ;;  %v2133_v46 = vpop.f32.mrb[93].mxu1 }
 0x512   : > { %v2887_v7 = vpop.eup %2886  ;;  %2235 = vst [vmem:[%s3672_s22 + $0x38] sm:$0xff] %v2885_v44  ;;  %v2134_v17 = vadd.f32 %v3657_v32, %v2133_v46  ;;  %v2619_v47 = vpop.f32.mrb[94].mxu1 }
 0x513   : > { %v2889_v49 = vpop.eup %2888  ;;  %2233 = vst [vmem:[%s3672_s22 + $0x28] sm:$0xff] %v2887_v7  ;;  %v2162_v50 = vsub.f32 0.0, %v2142_v45  ;;  %v2145_v51 = vadd.f32 %v2619_v47, %v3657_v32  ;;  %v2136_v8 = vpop.f32.mrb[95].mxu1 }
 0x514   : > { %v2891_v52 = vpop.eup %2890  ;;  %v2206_v53 = vadd.f32 1.0, %v2889_v49  ;;  %v2160_v54 = vsub.f32 0.0, %v2134_v17  ;;  %v2137_v55 = vadd.f32 %v3657_v32, %v2136_v8 }
 0x515   : > { %v2893_v57 = vpop.eup %2892  ;;  %v2204_v58 = vadd.f32 1.0, %v2891_v52  ;;  %v2163_v59 = vsub.f32 0.0, %v2145_v51  ;;  %v2192_v63 = vmul.f32 1.442695, %v2162_v50 }
 0x516   : > { %v2895_v61 = vpop.eup %2894  ;;  %2896 = vrcp.f32 %v2206_v53  ;;  %v2207_v62 = vadd.f32 1.0, %v2893_v57  ;;  %v2161_v1 = vsub.f32 0.0, %v2137_v55  ;;  %v2188_v5 = vmul.f32 1.442695, %v2160_v54 }
 0x517   : > { %2898 = vrcp.f32 %v2204_v58  ;;  %v2205_v2 = vadd.f32 1.0, %v2895_v61  ;;  %v2194_v9 = vmul.f32 1.442695, %v2163_v59 }
 0x518   : > { %2900 = vrcp.f32 %v2207_v62  ;;  %v2190_v11 = vmul.f32 1.442695, %v2161_v1 }
 0x519   : > { %2902 = vrcp.f32 %v2205_v2 }
 0x51a   : > { %2904 = vpow2.f32 %v2192_v63 }
 0x51b   : > { %2906 = vpow2.f32 %v2188_v5 }
 0x51c   : > { %2908 = vpow2.f32 %v2194_v9 }
 0x51d   : > { %2910 = vpow2.f32 %v2190_v11 }
 0x520   : > { %v2897_v32 = vpop.eup %2896 }
 0x521   : > { %v2899_v12 = vpop.eup %2898  ;;  %2238 = vst [vmem:[%s3672_s22 + $0x50] sm:$0xff] %v2897_v32 }
 0x522   : > { %v2901_v13 = vpop.eup %2900  ;;  %2236 = vst [vmem:[%s3672_s22 + $0x40] sm:$0xff] %v2899_v12 }
 0x523   : > { %v2903_v43 = vpop.eup %2902  ;;  %2239 = vst [vmem:[%s3672_s22 + $0x58] sm:$0xff] %v2901_v13 }
 0x524   : > { %v2905_v48 = vpop.eup %2904  ;;  %2237 = vst [vmem:[%s3672_s22 + $0x48] sm:$0xff] %v2903_v43 }
 0x525   : > { %v2907_v15 = vpop.eup %2906  ;;  %v2210_v16 = vadd.f32 1.0, %v2905_v48 }
 0x526   : > { %v2909_v24 = vpop.eup %2908  ;;  %v2208_v27 = vadd.f32 1.0, %v2907_v15 }
 0x527   : > { %v2911_v0 = vpop.eup %2910  ;;  %2912 = vrcp.f32 %v2210_v16  ;;  %v2211_v10 = vadd.f32 1.0, %v2909_v24 }
 0x528   : > { %2914 = vrcp.f32 %v2208_v27  ;;  %v2209_v20 = vadd.f32 1.0, %v2911_v0 }
 0x529   : > { %2916 = vrcp.f32 %v2211_v10 }
 0x52a   : > { %2918 = vrcp.f32 %v2209_v20 }
 0x531   : > { %v2913_v25 = vpop.eup %2912 }
 0x532   : > { %v2915_v56 = vpop.eup %2914  ;;  %2242 = vst [vmem:[%s3672_s22 + $0x70] sm:$0xff] %v2913_v25 }
 0x533   : > { %v2917_v60 = vpop.eup %2916  ;;  %2240 = vst [vmem:[%s3672_s22 + $0x60] sm:$0xff] %v2915_v56 }
 0x534   : > { %v2919_v35 = vpop.eup %2918  ;;  %2243 = vst [vmem:[%s3672_s22 + $0x78] sm:$0xff] %v2917_v60 }
 0x535   : > { %2241 = vst [vmem:[%s3672_s22 + $0x68] sm:$0xff] %v2919_v35 }
 0x536 PF: > { %s23_s17 = sadd.s32 1, %s2990_s17  }
 0x537   : > { %p20_p7 = scmp.ge.s32.totalorder %s23_s17, 4  }
 0x539   :  { %22 = sbr.rel (!%p20_p7) target bundleno = 2 (0x2), region = 103 }
 0x540   :  { %2266 = vsyncpa [#allocation3], 1 }
 0x541   :  { %2268 = vsyncpa [#allocation3 + $0x1], 1 }
 0x542   :  { %2269 = vsyncpa [#allocation5], 1 }

</bundles_post_ra>
